<compile_context>
chip_gen: v5e
topology: v5e:2x2
jax: 0.10.0
libtpu: 0.0.40
codegen_flags: <defaults>
</compile_context>

<pallas_src>
import functools

import jax
import jax.numpy as jnp
from jax import lax
from jax.experimental import pallas as pl
from jax.experimental.pallas import tpu as pltpu

VMEM_SPEC = pl.BlockSpec(memory_space=pltpu.MemorySpace.VMEM)

# contract dim 0 of both operands (lhs^T @ rhs); the transpose happens inside the MXU
_TN = (((0,), (0,)), ((), ()))


# ---------------------------------------------------------------------------
# Fused forward kernel
# ---------------------------------------------------------------------------
def _fused_forward_kernel(*refs, num_layers, eps, ln_eps):
    out_ref = refs[-1]
    it = iter(refs[:-1])
    x_ref, e_ref, src_ref, dst_ref, mask_ref = [next(it) for _ in range(5)]
    gnn = []
    for _ in range(num_layers):
        gnn.append(dict(we=next(it), be=next(it), w1=next(it), b1=next(it),
                        w2=next(it), b2=next(it), ln_g=next(it), ln_b=next(it)))
    gw_ref, gb_ref = next(it), next(it)
    rw1, rb1, rs1, rt1, rw2, rb2, rs2, rt2, rw3, rb3 = [next(it) for _ in range(10)]

    neg = jnp.float32(-1e30)

    src = src_ref[...]            # [E, N] bf16
    dst = dst_ref[...]            # [E, N] bf16
    e_attr = e_ref[...]           # [E, Fe] f32
    mask = mask_ref[...]          # [N, G]  f32

    h = x_ref[...]                # [N, F]  f32
    for i, p in enumerate(gnn):
        # ---- GINEConv ----------------------------------------------------
        # gather source-node features: [E, N] @ [N, Din]  (bf16 in, f32 acc)
        x_src = jnp.dot(src, h.astype(jnp.bfloat16),
                        preferred_element_type=jnp.float32)
        e_emb = jnp.dot(e_attr, p["we"][...],
                        preferred_element_type=jnp.float32) + p["be"][...]
        msg = jnp.maximum(x_src + e_emb, 0.0)                        # [E, Din]
        # scatter-add to destination nodes: dst^T @ msg, transposed on the MXU
        aggr = lax.dot_general(dst, msg.astype(jnp.bfloat16), _TN,
                               preferred_element_type=jnp.float32)   # [N, Din]
        z = (1.0 + eps) * h + aggr
        # GIN MLP: Linear -> ReLU -> Linear
        z = jnp.maximum(jnp.dot(z, p["w1"][...],
                                preferred_element_type=jnp.float32) + p["b1"][...], 0.0)
        z = jnp.dot(z, p["w2"][...],
                    preferred_element_type=jnp.float32) + p["b2"][...]   # [N, H]
        # ---- LayerNorm -> ReLU -> Dropout(eval: identity) -> residual -----
        mu = jnp.mean(z, axis=-1, keepdims=True)
        var = jnp.mean((z - mu) ** 2, axis=-1, keepdims=True)
        z = (z - mu) * lax.rsqrt(var + ln_eps) * p["ln_g"][...] + p["ln_b"][...]
        z = jnp.maximum(z, 0.0)
        h = z if i == 0 else z + h        # residual only when dims match

    # ---- attentional pooling (per-graph stable softmax) --------------------
    gate = jnp.dot(h, gw_ref[...],
                   preferred_element_type=jnp.float32) + gb_ref[...]         # [N, 1]
    gmax = jnp.max(jnp.where(mask > 0.0, gate, neg), axis=0, keepdims=True)  # [1, G]
    shift = jnp.max(jnp.where(mask > 0.0, gmax, neg), axis=1, keepdims=True) # [N, 1]
    e = jnp.exp(gate - shift)                                                # [N, 1]
    num = lax.dot_general(mask, h * e, _TN,
                          preferred_element_type=jnp.float32)                # [G, H]
    den = lax.dot_general(mask, e, _TN,
                          preferred_element_type=jnp.float32)                # [G, 1]
    g_emb = num * pl.reciprocal(den, approx=True)

    # ---- MLP regressor (BatchNorm folded to scale/shift, eval mode) --------
    r = jnp.dot(g_emb, rw1[...], preferred_element_type=jnp.float32) + rb1[...]
    r = jnp.maximum(r * rs1[...] + rt1[...], 0.0)
    r = jnp.dot(r, rw2[...], preferred_element_type=jnp.float32) + rb2[...]
    r = jnp.maximum(r * rs2[...] + rt2[...], 0.0)
    out_ref[...] = jnp.dot(r, rw3[...],
                           preferred_element_type=jnp.float32) + rb3[...]


# ---------------------------------------------------------------------------
# Wrapper: one fused pallas_call for the whole model
# ---------------------------------------------------------------------------
def model_forward(params, x, edge_index, edge_attr, batch, *, num_graphs):
    n = x.shape[0]
    # bf16 one-hots: 0/1 are exact in bf16; halves HBM/VMEM traffic, native MXU dtype.
    src_oh = jax.nn.one_hot(edge_index[0], n, dtype=jnp.bfloat16)   # [E, N]
    dst_oh = jax.nn.one_hot(edge_index[1], n, dtype=jnp.bfloat16)   # [E, N] (no .T copy)
    mask = jax.nn.one_hot(batch, num_graphs, dtype=jnp.float32)     # [N, G]

    flat = [x, edge_attr, src_oh, dst_oh, mask]
    for lp in params["gnn"]:
        flat += [lp["we"], lp["be"], lp["w1"], lp["b1"],
                 lp["w2"], lp["b2"], lp["ln_g"], lp["ln_b"]]
    flat += [params["pool"]["gw"], params["pool"]["gb"]]
    r = params["reg"]
    flat += [r["w1"], r["b1"], r["s1"], r["t1"],
             r["w2"], r["b2"], r["s2"], r["t2"], r["w3"], r["b3"]]

    kernel = functools.partial(_fused_forward_kernel,
                               num_layers=len(params["gnn"]),
                               eps=0.0, ln_eps=1e-5)
    return pl.pallas_call(
        kernel,
        out_shape=jax.ShapeDtypeStruct((num_graphs, 1), jnp.float32),
        in_specs=[VMEM_SPEC] * len(flat),
        out_specs=VMEM_SPEC,
    )(*flat)


# ---------------------------------------------------------------------------
# Deterministic parameter init (PyTorch-Linear-style uniform)
# ---------------------------------------------------------------------------
def dense_init(key, fan_in, fan_out):
    k1, k2 = jax.random.split(key)
    bound = 1.0 / float(fan_in) ** 0.5
    w = jax.random.uniform(k1, (fan_in, fan_out), jnp.float32, -bound, bound)
    b = jax.random.uniform(k2, (1, fan_out), jnp.float32, -bound, bound)
    return w, b


def init_params(key, node_f, edge_f, hidden, num_layers, reg_dims):
    keys = jax.random.split(key, num_layers + 2)
    gnn = []
    in_dim = node_f
    for i in range(num_layers):
        k = jax.random.split(keys[i], 3)
        we, be = dense_init(k[0], edge_f, in_dim)     # GINEConv edge Linear(edge_f -> in_dim)
        w1, b1 = dense_init(k[1], in_dim, hidden)     # GIN MLP layer 1
        w2, b2 = dense_init(k[2], hidden, hidden)     # GIN MLP layer 2
        gnn.append(dict(we=we, be=be, w1=w1, b1=b1, w2=w2, b2=b2,
                        ln_g=jnp.ones((1, hidden), jnp.float32),
                        ln_b=jnp.zeros((1, hidden), jnp.float32)))
        in_dim = hidden

    gw, gb = dense_init(keys[num_layers], hidden, 1)  # attention gate Linear(H -> 1)
    pool = dict(gw=gw, gb=gb)

    k = jax.random.split(keys[num_layers + 1], 3)
    d1, d2 = reg_dims
    w1, b1 = dense_init(k[0], hidden, d1)
    w2, b2 = dense_init(k[1], d1, d2)
    w3, b3 = dense_init(k[2], d2, 1)
    # BatchNorm1d eval mode with fresh running stats: scale = 1/sqrt(1+eps), shift = 0
    bn = 1.0 / (1.0 + 1e-5) ** 0.5
    reg = dict(w1=w1, b1=b1, s1=jnp.full((1, d1), bn, jnp.float32),
               t1=jnp.zeros((1, d1), jnp.float32),
               w2=w2, b2=b2, s2=jnp.full((1, d2), bn, jnp.float32),
               t2=jnp.zeros((1, d2), jnp.float32),
               w3=w3, b3=b3)
    return dict(gnn=gnn, pool=pool, reg=reg)


# ---------------------------------------------------------------------------
if __name__ == "__main__":
    NODE_F, EDGE_F, HIDDEN = 16, 8, 128      # HIDDEN=128 -> lane-dense activations
    N_GRAPHS, NODES_PER_G, EDGES_PER_G = 3, 8, 16
    N_NODES = N_GRAPHS * NODES_PER_G
    N_EDGES = N_GRAPHS * EDGES_PER_G
    N_LAYERS = 3

    key = jax.random.PRNGKey(0)
    kx, ke, ki, kp = jax.random.split(key, 4)

    x = jax.random.normal(kx, (N_NODES, NODE_F), jnp.float32)
    edge_attr = jax.random.normal(ke, (N_EDGES, EDGE_F), jnp.float32)
    # edges sampled within each graph
    kis = jax.random.split(ki, N_GRAPHS)
    edge_index = jnp.concatenate(
        [jax.random.randint(kis[g], (2, EDGES_PER_G), 0, NODES_PER_G) + g * NODES_PER_G
         for g in range(N_GRAPHS)], axis=1)
    batch = jnp.repeat(jnp.arange(N_GRAPHS, dtype=jnp.int32), NODES_PER_G)

    params = init_params(kp, NODE_F, EDGE_F, HIDDEN, N_LAYERS, [128, 64])

    # TODO(synk): dropout (p=0.1 / 0.15) and training-mode BatchNorm are inference no-ops here.
    fwd = jax.jit(functools.partial(model_forward, num_graphs=N_GRAPHS))
    out = jax.block_until_ready(fwd(params, x, edge_index, edge_attr, batch))

    assert out.shape == (N_GRAPHS, 1), out.shape
    assert bool(jnp.all(jnp.isfinite(out)))
    print("KERNEL_OK")
</pallas_src>

<mosaic_0001>
module attributes {stable_mosaic.version = 11 : i64} {
  func.func @_fused_forward_kernel(%arg0: memref<24x16xf32, #tpu.memory_space<vmem>>, %arg1: memref<48x8xf32, #tpu.memory_space<vmem>>, %arg2: memref<48x24xbf16, #tpu.memory_space<vmem>>, %arg3: memref<48x24xbf16, #tpu.memory_space<vmem>>, %arg4: memref<24x3xf32, #tpu.memory_space<vmem>>, %arg5: memref<8x16xf32, #tpu.memory_space<vmem>>, %arg6: memref<1x16xf32, #tpu.memory_space<vmem>>, %arg7: memref<16x128xf32, #tpu.memory_space<vmem>>, %arg8: memref<1x128xf32, #tpu.memory_space<vmem>>, %arg9: memref<128x128xf32, #tpu.memory_space<vmem>>, %arg10: memref<1x128xf32, #tpu.memory_space<vmem>>, %arg11: memref<1x128xf32, #tpu.memory_space<vmem>>, %arg12: memref<1x128xf32, #tpu.memory_space<vmem>>, %arg13: memref<8x128xf32, #tpu.memory_space<vmem>>, %arg14: memref<1x128xf32, #tpu.memory_space<vmem>>, %arg15: memref<128x128xf32, #tpu.memory_space<vmem>>, %arg16: memref<1x128xf32, #tpu.memory_space<vmem>>, %arg17: memref<128x128xf32, #tpu.memory_space<vmem>>, %arg18: memref<1x128xf32, #tpu.memory_space<vmem>>, %arg19: memref<1x128xf32, #tpu.memory_space<vmem>>, %arg20: memref<1x128xf32, #tpu.memory_space<vmem>>, %arg21: memref<8x128xf32, #tpu.memory_space<vmem>>, %arg22: memref<1x128xf32, #tpu.memory_space<vmem>>, %arg23: memref<128x128xf32, #tpu.memory_space<vmem>>, %arg24: memref<1x128xf32, #tpu.memory_space<vmem>>, %arg25: memref<128x128xf32, #tpu.memory_space<vmem>>, %arg26: memref<1x128xf32, #tpu.memory_space<vmem>>, %arg27: memref<1x128xf32, #tpu.memory_space<vmem>>, %arg28: memref<1x128xf32, #tpu.memory_space<vmem>>, %arg29: memref<128x1xf32, #tpu.memory_space<vmem>>, %arg30: memref<1x1xf32, #tpu.memory_space<vmem>>, %arg31: memref<128x128xf32, #tpu.memory_space<vmem>>, %arg32: memref<1x128xf32, #tpu.memory_space<vmem>>, %arg33: memref<1x128xf32, #tpu.memory_space<vmem>>, %arg34: memref<1x128xf32, #tpu.memory_space<vmem>>, %arg35: memref<128x64xf32, #tpu.memory_space<vmem>>, %arg36: memref<1x64xf32, #tpu.memory_space<vmem>>, %arg37: memref<1x64xf32, #tpu.memory_space<vmem>>, %arg38: memref<1x64xf32, #tpu.memory_space<vmem>>, %arg39: memref<64x1xf32, #tpu.memory_space<vmem>>, %arg40: memref<1x1xf32, #tpu.memory_space<vmem>>, %arg41: memref<3x1xf32, #tpu.memory_space<vmem>>) attributes {dimension_semantics = [], scalar_prefetch = 0 : i64, scratch_operands = 0 : i64, tpu.core_type = #tpu.core_type<tc>} {
    %c0 = arith.constant 0 : index
    %c0_0 = arith.constant 0 : index
    %0 = vector.load %arg2[%c0, %c0_0] : memref<48x24xbf16, #tpu.memory_space<vmem>>, vector<48x24xbf16>
    %c0_1 = arith.constant 0 : index
    %c0_2 = arith.constant 0 : index
    %1 = vector.load %arg3[%c0_1, %c0_2] : memref<48x24xbf16, #tpu.memory_space<vmem>>, vector<48x24xbf16>
    %c0_3 = arith.constant 0 : index
    %c0_4 = arith.constant 0 : index
    %2 = vector.load %arg1[%c0_3, %c0_4] : memref<48x8xf32, #tpu.memory_space<vmem>>, vector<48x8xf32>
    %c0_5 = arith.constant 0 : index
    %c0_6 = arith.constant 0 : index
    %3 = vector.load %arg4[%c0_5, %c0_6] : memref<24x3xf32, #tpu.memory_space<vmem>>, vector<24x3xf32>
    %c0_7 = arith.constant 0 : index
    %c0_8 = arith.constant 0 : index
    %4 = vector.load %arg0[%c0_7, %c0_8] : memref<24x16xf32, #tpu.memory_space<vmem>>, vector<24x16xf32>
    %5 = arith.truncf %4 : vector<24x16xf32> to vector<24x16xbf16>
    %cst = arith.constant dense<0.000000e+00> : vector<48x16xf32>
    %6 = tpu.matmul %0, %5, %cst {dimension_numbers = #tpu.dot_dimension_numbers<[1], [0], [0], [1], [0, 0, 1, 1], [], []>} : vector<48x24xbf16>, vector<24x16xbf16>, vector<48x16xf32> -> vector<48x16xf32>
    %c0_9 = arith.constant 0 : index
    %c0_10 = arith.constant 0 : index
    %7 = vector.load %arg5[%c0_9, %c0_10] : memref<8x16xf32, #tpu.memory_space<vmem>>, vector<8x16xf32>
    %cst_11 = arith.constant dense<0.000000e+00> : vector<48x16xf32>
    %8 = tpu.matmul %2, %7, %cst_11 {dimension_numbers = #tpu.dot_dimension_numbers<[1], [0], [0], [1], [0, 0, 1, 1], [], []>} : vector<48x8xf32>, vector<8x16xf32>, vector<48x16xf32> -> vector<48x16xf32>
    %c0_12 = arith.constant 0 : index
    %c0_13 = arith.constant 0 : index
    %9 = vector.load %arg6[%c0_12, %c0_13] : memref<1x16xf32, #tpu.memory_space<vmem>>, vector<1x16xf32>
    %10 = vector.broadcast %9 : vector<1x16xf32> to vector<48x16xf32>
    %11 = arith.addf %8, %10 : vector<48x16xf32>
    %12 = arith.addf %6, %11 : vector<48x16xf32>
    %cst_14 = arith.constant 0.000000e+00 : f32
    %13 = vector.broadcast %cst_14 : f32 to vector<48x16xf32>
    %14 = arith.maximumf %12, %13 : vector<48x16xf32>
    %15 = arith.truncf %14 : vector<48x16xf32> to vector<48x16xbf16>
    %cst_15 = arith.constant dense<0.000000e+00> : vector<24x16xf32>
    %16 = tpu.matmul %1, %15, %cst_15 {dimension_numbers = #tpu.dot_dimension_numbers<[0], [0], [1], [1], [0, 1, 1, 1], [], []>} : vector<48x24xbf16>, vector<48x16xbf16>, vector<24x16xf32> -> vector<24x16xf32>
    %cst_16 = arith.constant 1.000000e+00 : f32
    %17 = vector.broadcast %cst_16 : f32 to vector<24x16xf32>
    %18 = arith.mulf %17, %4 : vector<24x16xf32>
    %19 = arith.addf %18, %16 : vector<24x16xf32>
    %c0_17 = arith.constant 0 : index
    %c0_18 = arith.constant 0 : index
    %20 = vector.load %arg7[%c0_17, %c0_18] : memref<16x128xf32, #tpu.memory_space<vmem>>, vector<16x128xf32>
    %cst_19 = arith.constant dense<0.000000e+00> : vector<24x128xf32>
    %21 = tpu.matmul %19, %20, %cst_19 {dimension_numbers = #tpu.dot_dimension_numbers<[1], [0], [0], [1], [0, 0, 1, 1], [], []>} : vector<24x16xf32>, vector<16x128xf32>, vector<24x128xf32> -> vector<24x128xf32>
    %c0_20 = arith.constant 0 : index
    %c0_21 = arith.constant 0 : index
    %22 = vector.load %arg8[%c0_20, %c0_21] : memref<1x128xf32, #tpu.memory_space<vmem>>, vector<1x128xf32>
    %23 = vector.broadcast %22 : vector<1x128xf32> to vector<24x128xf32>
    %24 = arith.addf %21, %23 : vector<24x128xf32>
    %cst_22 = arith.constant 0.000000e+00 : f32
    %25 = vector.broadcast %cst_22 : f32 to vector<24x128xf32>
    %26 = arith.maximumf %24, %25 : vector<24x128xf32>
    %c0_23 = arith.constant 0 : index
    %c0_24 = arith.constant 0 : index
    %27 = vector.load %arg9[%c0_23, %c0_24] : memref<128x128xf32, #tpu.memory_space<vmem>>, vector<128x128xf32>
    %cst_25 = arith.constant dense<0.000000e+00> : vector<24x128xf32>
    %28 = tpu.matmul %26, %27, %cst_25 {dimension_numbers = #tpu.dot_dimension_numbers<[1], [0], [0], [1], [0, 0, 1, 1], [], []>} : vector<24x128xf32>, vector<128x128xf32>, vector<24x128xf32> -> vector<24x128xf32>
    %c0_26 = arith.constant 0 : index
    %c0_27 = arith.constant 0 : index
    %29 = vector.load %arg10[%c0_26, %c0_27] : memref<1x128xf32, #tpu.memory_space<vmem>>, vector<1x128xf32>
    %30 = vector.broadcast %29 : vector<1x128xf32> to vector<24x128xf32>
    %31 = arith.addf %28, %30 : vector<24x128xf32>
    %cst_28 = arith.constant dense<0.000000e+00> : vector<24xf32>
    %32 = vector.multi_reduction <add>, %31, %cst_28 [1] : vector<24x128xf32> to vector<24xf32>
    %33 = vector.shape_cast %32 : vector<24xf32> to vector<24x1xf32>
    %cst_29 = arith.constant 1.280000e+02 : f32
    %34 = vector.broadcast %cst_29 : f32 to vector<24x1xf32>
    %35 = arith.divf %33, %34 : vector<24x1xf32>
    %36 = vector.broadcast %35 : vector<24x1xf32> to vector<24x128xf32>
    %37 = arith.subf %31, %36 : vector<24x128xf32>
    %38 = arith.mulf %37, %37 : vector<24x128xf32>
    %cst_30 = arith.constant dense<0.000000e+00> : vector<24xf32>
    %39 = vector.multi_reduction <add>, %38, %cst_30 [1] : vector<24x128xf32> to vector<24xf32>
    %40 = vector.shape_cast %39 : vector<24xf32> to vector<24x1xf32>
    %cst_31 = arith.constant 1.280000e+02 : f32
    %41 = vector.broadcast %cst_31 : f32 to vector<24x1xf32>
    %42 = arith.divf %40, %41 : vector<24x1xf32>
    %43 = vector.broadcast %35 : vector<24x1xf32> to vector<24x128xf32>
    %44 = arith.subf %31, %43 : vector<24x128xf32>
    %cst_32 = arith.constant 9.99999974E-6 : f32
    %45 = vector.broadcast %cst_32 : f32 to vector<24x1xf32>
    %46 = arith.addf %42, %45 : vector<24x1xf32>
    %47 = math.rsqrt %46 : vector<24x1xf32>
    %48 = vector.broadcast %47 : vector<24x1xf32> to vector<24x128xf32>
    %49 = arith.mulf %44, %48 : vector<24x128xf32>
    %c0_33 = arith.constant 0 : index
    %c0_34 = arith.constant 0 : index
    %50 = vector.load %arg11[%c0_33, %c0_34] : memref<1x128xf32, #tpu.memory_space<vmem>>, vector<1x128xf32>
    %51 = vector.broadcast %50 : vector<1x128xf32> to vector<24x128xf32>
    %52 = arith.mulf %49, %51 : vector<24x128xf32>
    %c0_35 = arith.constant 0 : index
    %c0_36 = arith.constant 0 : index
    %53 = vector.load %arg12[%c0_35, %c0_36] : memref<1x128xf32, #tpu.memory_space<vmem>>, vector<1x128xf32>
    %54 = vector.broadcast %53 : vector<1x128xf32> to vector<24x128xf32>
    %55 = arith.addf %52, %54 : vector<24x128xf32>
    %cst_37 = arith.constant 0.000000e+00 : f32
    %56 = vector.broadcast %cst_37 : f32 to vector<24x128xf32>
    %57 = arith.maximumf %55, %56 : vector<24x128xf32>
    %58 = arith.truncf %57 : vector<24x128xf32> to vector<24x128xbf16>
    %cst_38 = arith.constant dense<0.000000e+00> : vector<48x128xf32>
    %59 = tpu.matmul %0, %58, %cst_38 {dimension_numbers = #tpu.dot_dimension_numbers<[1], [0], [0], [1], [0, 0, 1, 1], [], []>} : vector<48x24xbf16>, vector<24x128xbf16>, vector<48x128xf32> -> vector<48x128xf32>
    %c0_39 = arith.constant 0 : index
    %c0_40 = arith.constant 0 : index
    %60 = vector.load %arg13[%c0_39, %c0_40] : memref<8x128xf32, #tpu.memory_space<vmem>>, vector<8x128xf32>
    %cst_41 = arith.constant dense<0.000000e+00> : vector<48x128xf32>
    %61 = tpu.matmul %2, %60, %cst_41 {dimension_numbers = #tpu.dot_dimension_numbers<[1], [0], [0], [1], [0, 0, 1, 1], [], []>} : vector<48x8xf32>, vector<8x128xf32>, vector<48x128xf32> -> vector<48x128xf32>
    %c0_42 = arith.constant 0 : index
    %c0_43 = arith.constant 0 : index
    %62 = vector.load %arg14[%c0_42, %c0_43] : memref<1x128xf32, #tpu.memory_space<vmem>>, vector<1x128xf32>
    %63 = vector.broadcast %62 : vector<1x128xf32> to vector<48x128xf32>
    %64 = arith.addf %61, %63 : vector<48x128xf32>
    %65 = arith.addf %59, %64 : vector<48x128xf32>
    %cst_44 = arith.constant 0.000000e+00 : f32
    %66 = vector.broadcast %cst_44 : f32 to vector<48x128xf32>
    %67 = arith.maximumf %65, %66 : vector<48x128xf32>
    %68 = arith.truncf %67 : vector<48x128xf32> to vector<48x128xbf16>
    %cst_45 = arith.constant dense<0.000000e+00> : vector<24x128xf32>
    %69 = tpu.matmul %1, %68, %cst_45 {dimension_numbers = #tpu.dot_dimension_numbers<[0], [0], [1], [1], [0, 1, 1, 1], [], []>} : vector<48x24xbf16>, vector<48x128xbf16>, vector<24x128xf32> -> vector<24x128xf32>
    %cst_46 = arith.constant 1.000000e+00 : f32
    %70 = vector.broadcast %cst_46 : f32 to vector<24x128xf32>
    %71 = arith.mulf %70, %57 : vector<24x128xf32>
    %72 = arith.addf %71, %69 : vector<24x128xf32>
    %c0_47 = arith.constant 0 : index
    %c0_48 = arith.constant 0 : index
    %73 = vector.load %arg15[%c0_47, %c0_48] : memref<128x128xf32, #tpu.memory_space<vmem>>, vector<128x128xf32>
    %cst_49 = arith.constant dense<0.000000e+00> : vector<24x128xf32>
    %74 = tpu.matmul %72, %73, %cst_49 {dimension_numbers = #tpu.dot_dimension_numbers<[1], [0], [0], [1], [0, 0, 1, 1], [], []>} : vector<24x128xf32>, vector<128x128xf32>, vector<24x128xf32> -> vector<24x128xf32>
    %c0_50 = arith.constant 0 : index
    %c0_51 = arith.constant 0 : index
    %75 = vector.load %arg16[%c0_50, %c0_51] : memref<1x128xf32, #tpu.memory_space<vmem>>, vector<1x128xf32>
    %76 = vector.broadcast %75 : vector<1x128xf32> to vector<24x128xf32>
    %77 = arith.addf %74, %76 : vector<24x128xf32>
    %cst_52 = arith.constant 0.000000e+00 : f32
    %78 = vector.broadcast %cst_52 : f32 to vector<24x128xf32>
    %79 = arith.maximumf %77, %78 : vector<24x128xf32>
    %c0_53 = arith.constant 0 : index
    %c0_54 = arith.constant 0 : index
    %80 = vector.load %arg17[%c0_53, %c0_54] : memref<128x128xf32, #tpu.memory_space<vmem>>, vector<128x128xf32>
    %cst_55 = arith.constant dense<0.000000e+00> : vector<24x128xf32>
    %81 = tpu.matmul %79, %80, %cst_55 {dimension_numbers = #tpu.dot_dimension_numbers<[1], [0], [0], [1], [0, 0, 1, 1], [], []>} : vector<24x128xf32>, vector<128x128xf32>, vector<24x128xf32> -> vector<24x128xf32>
    %c0_56 = arith.constant 0 : index
    %c0_57 = arith.constant 0 : index
    %82 = vector.load %arg18[%c0_56, %c0_57] : memref<1x128xf32, #tpu.memory_space<vmem>>, vector<1x128xf32>
    %83 = vector.broadcast %82 : vector<1x128xf32> to vector<24x128xf32>
    %84 = arith.addf %81, %83 : vector<24x128xf32>
    %cst_58 = arith.constant dense<0.000000e+00> : vector<24xf32>
    %85 = vector.multi_reduction <add>, %84, %cst_58 [1] : vector<24x128xf32> to vector<24xf32>
    %86 = vector.shape_cast %85 : vector<24xf32> to vector<24x1xf32>
    %cst_59 = arith.constant 1.280000e+02 : f32
    %87 = vector.broadcast %cst_59 : f32 to vector<24x1xf32>
    %88 = arith.divf %86, %87 : vector<24x1xf32>
    %89 = vector.broadcast %88 : vector<24x1xf32> to vector<24x128xf32>
    %90 = arith.subf %84, %89 : vector<24x128xf32>
    %91 = arith.mulf %90, %90 : vector<24x128xf32>
    %cst_60 = arith.constant dense<0.000000e+00> : vector<24xf32>
    %92 = vector.multi_reduction <add>, %91, %cst_60 [1] : vector<24x128xf32> to vector<24xf32>
    %93 = vector.shape_cast %92 : vector<24xf32> to vector<24x1xf32>
    %cst_61 = arith.constant 1.280000e+02 : f32
    %94 = vector.broadcast %cst_61 : f32 to vector<24x1xf32>
    %95 = arith.divf %93, %94 : vector<24x1xf32>
    %96 = vector.broadcast %88 : vector<24x1xf32> to vector<24x128xf32>
    %97 = arith.subf %84, %96 : vector<24x128xf32>
    %cst_62 = arith.constant 9.99999974E-6 : f32
    %98 = vector.broadcast %cst_62 : f32 to vector<24x1xf32>
    %99 = arith.addf %95, %98 : vector<24x1xf32>
    %100 = math.rsqrt %99 : vector<24x1xf32>
    %101 = vector.broadcast %100 : vector<24x1xf32> to vector<24x128xf32>
    %102 = arith.mulf %97, %101 : vector<24x128xf32>
    %c0_63 = arith.constant 0 : index
    %c0_64 = arith.constant 0 : index
    %103 = vector.load %arg19[%c0_63, %c0_64] : memref<1x128xf32, #tpu.memory_space<vmem>>, vector<1x128xf32>
    %104 = vector.broadcast %103 : vector<1x128xf32> to vector<24x128xf32>
    %105 = arith.mulf %102, %104 : vector<24x128xf32>
    %c0_65 = arith.constant 0 : index
    %c0_66 = arith.constant 0 : index
    %106 = vector.load %arg20[%c0_65, %c0_66] : memref<1x128xf32, #tpu.memory_space<vmem>>, vector<1x128xf32>
    %107 = vector.broadcast %106 : vector<1x128xf32> to vector<24x128xf32>
    %108 = arith.addf %105, %107 : vector<24x128xf32>
    %cst_67 = arith.constant 0.000000e+00 : f32
    %109 = vector.broadcast %cst_67 : f32 to vector<24x128xf32>
    %110 = arith.maximumf %108, %109 : vector<24x128xf32>
    %111 = arith.addf %110, %57 : vector<24x128xf32>
    %112 = arith.truncf %111 : vector<24x128xf32> to vector<24x128xbf16>
    %cst_68 = arith.constant dense<0.000000e+00> : vector<48x128xf32>
    %113 = tpu.matmul %0, %112, %cst_68 {dimension_numbers = #tpu.dot_dimension_numbers<[1], [0], [0], [1], [0, 0, 1, 1], [], []>} : vector<48x24xbf16>, vector<24x128xbf16>, vector<48x128xf32> -> vector<48x128xf32>
    %c0_69 = arith.constant 0 : index
    %c0_70 = arith.constant 0 : index
    %114 = vector.load %arg21[%c0_69, %c0_70] : memref<8x128xf32, #tpu.memory_space<vmem>>, vector<8x128xf32>
    %cst_71 = arith.constant dense<0.000000e+00> : vector<48x128xf32>
    %115 = tpu.matmul %2, %114, %cst_71 {dimension_numbers = #tpu.dot_dimension_numbers<[1], [0], [0], [1], [0, 0, 1, 1], [], []>} : vector<48x8xf32>, vector<8x128xf32>, vector<48x128xf32> -> vector<48x128xf32>
    %c0_72 = arith.constant 0 : index
    %c0_73 = arith.constant 0 : index
    %116 = vector.load %arg22[%c0_72, %c0_73] : memref<1x128xf32, #tpu.memory_space<vmem>>, vector<1x128xf32>
    %117 = vector.broadcast %116 : vector<1x128xf32> to vector<48x128xf32>
    %118 = arith.addf %115, %117 : vector<48x128xf32>
    %119 = arith.addf %113, %118 : vector<48x128xf32>
    %cst_74 = arith.constant 0.000000e+00 : f32
    %120 = vector.broadcast %cst_74 : f32 to vector<48x128xf32>
    %121 = arith.maximumf %119, %120 : vector<48x128xf32>
    %122 = arith.truncf %121 : vector<48x128xf32> to vector<48x128xbf16>
    %cst_75 = arith.constant dense<0.000000e+00> : vector<24x128xf32>
    %123 = tpu.matmul %1, %122, %cst_75 {dimension_numbers = #tpu.dot_dimension_numbers<[0], [0], [1], [1], [0, 1, 1, 1], [], []>} : vector<48x24xbf16>, vector<48x128xbf16>, vector<24x128xf32> -> vector<24x128xf32>
    %cst_76 = arith.constant 1.000000e+00 : f32
    %124 = vector.broadcast %cst_76 : f32 to vector<24x128xf32>
    %125 = arith.mulf %124, %111 : vector<24x128xf32>
    %126 = arith.addf %125, %123 : vector<24x128xf32>
    %c0_77 = arith.constant 0 : index
    %c0_78 = arith.constant 0 : index
    %127 = vector.load %arg23[%c0_77, %c0_78] : memref<128x128xf32, #tpu.memory_space<vmem>>, vector<128x128xf32>
    %cst_79 = arith.constant dense<0.000000e+00> : vector<24x128xf32>
    %128 = tpu.matmul %126, %127, %cst_79 {dimension_numbers = #tpu.dot_dimension_numbers<[1], [0], [0], [1], [0, 0, 1, 1], [], []>} : vector<24x128xf32>, vector<128x128xf32>, vector<24x128xf32> -> vector<24x128xf32>
    %c0_80 = arith.constant 0 : index
    %c0_81 = arith.constant 0 : index
    %129 = vector.load %arg24[%c0_80, %c0_81] : memref<1x128xf32, #tpu.memory_space<vmem>>, vector<1x128xf32>
    %130 = vector.broadcast %129 : vector<1x128xf32> to vector<24x128xf32>
    %131 = arith.addf %128, %130 : vector<24x128xf32>
    %cst_82 = arith.constant 0.000000e+00 : f32
    %132 = vector.broadcast %cst_82 : f32 to vector<24x128xf32>
    %133 = arith.maximumf %131, %132 : vector<24x128xf32>
    %c0_83 = arith.constant 0 : index
    %c0_84 = arith.constant 0 : index
    %134 = vector.load %arg25[%c0_83, %c0_84] : memref<128x128xf32, #tpu.memory_space<vmem>>, vector<128x128xf32>
    %cst_85 = arith.constant dense<0.000000e+00> : vector<24x128xf32>
    %135 = tpu.matmul %133, %134, %cst_85 {dimension_numbers = #tpu.dot_dimension_numbers<[1], [0], [0], [1], [0, 0, 1, 1], [], []>} : vector<24x128xf32>, vector<128x128xf32>, vector<24x128xf32> -> vector<24x128xf32>
    %c0_86 = arith.constant 0 : index
    %c0_87 = arith.constant 0 : index
    %136 = vector.load %arg26[%c0_86, %c0_87] : memref<1x128xf32, #tpu.memory_space<vmem>>, vector<1x128xf32>
    %137 = vector.broadcast %136 : vector<1x128xf32> to vector<24x128xf32>
    %138 = arith.addf %135, %137 : vector<24x128xf32>
    %cst_88 = arith.constant dense<0.000000e+00> : vector<24xf32>
    %139 = vector.multi_reduction <add>, %138, %cst_88 [1] : vector<24x128xf32> to vector<24xf32>
    %140 = vector.shape_cast %139 : vector<24xf32> to vector<24x1xf32>
    %cst_89 = arith.constant 1.280000e+02 : f32
    %141 = vector.broadcast %cst_89 : f32 to vector<24x1xf32>
    %142 = arith.divf %140, %141 : vector<24x1xf32>
    %143 = vector.broadcast %142 : vector<24x1xf32> to vector<24x128xf32>
    %144 = arith.subf %138, %143 : vector<24x128xf32>
    %145 = arith.mulf %144, %144 : vector<24x128xf32>
    %cst_90 = arith.constant dense<0.000000e+00> : vector<24xf32>
    %146 = vector.multi_reduction <add>, %145, %cst_90 [1] : vector<24x128xf32> to vector<24xf32>
    %147 = vector.shape_cast %146 : vector<24xf32> to vector<24x1xf32>
    %cst_91 = arith.constant 1.280000e+02 : f32
    %148 = vector.broadcast %cst_91 : f32 to vector<24x1xf32>
    %149 = arith.divf %147, %148 : vector<24x1xf32>
    %150 = vector.broadcast %142 : vector<24x1xf32> to vector<24x128xf32>
    %151 = arith.subf %138, %150 : vector<24x128xf32>
    %cst_92 = arith.constant 9.99999974E-6 : f32
    %152 = vector.broadcast %cst_92 : f32 to vector<24x1xf32>
    %153 = arith.addf %149, %152 : vector<24x1xf32>
    %154 = math.rsqrt %153 : vector<24x1xf32>
    %155 = vector.broadcast %154 : vector<24x1xf32> to vector<24x128xf32>
    %156 = arith.mulf %151, %155 : vector<24x128xf32>
    %c0_93 = arith.constant 0 : index
    %c0_94 = arith.constant 0 : index
    %157 = vector.load %arg27[%c0_93, %c0_94] : memref<1x128xf32, #tpu.memory_space<vmem>>, vector<1x128xf32>
    %158 = vector.broadcast %157 : vector<1x128xf32> to vector<24x128xf32>
    %159 = arith.mulf %156, %158 : vector<24x128xf32>
    %c0_95 = arith.constant 0 : index
    %c0_96 = arith.constant 0 : index
    %160 = vector.load %arg28[%c0_95, %c0_96] : memref<1x128xf32, #tpu.memory_space<vmem>>, vector<1x128xf32>
    %161 = vector.broadcast %160 : vector<1x128xf32> to vector<24x128xf32>
    %162 = arith.addf %159, %161 : vector<24x128xf32>
    %cst_97 = arith.constant 0.000000e+00 : f32
    %163 = vector.broadcast %cst_97 : f32 to vector<24x128xf32>
    %164 = arith.maximumf %162, %163 : vector<24x128xf32>
    %165 = arith.addf %164, %111 : vector<24x128xf32>
    %c0_98 = arith.constant 0 : index
    %c0_99 = arith.constant 0 : index
    %166 = vector.load %arg29[%c0_98, %c0_99] : memref<128x1xf32, #tpu.memory_space<vmem>>, vector<128x1xf32>
    %cst_100 = arith.constant dense<0.000000e+00> : vector<24x1xf32>
    %167 = tpu.matmul %165, %166, %cst_100 {dimension_numbers = #tpu.dot_dimension_numbers<[1], [0], [0], [1], [0, 0, 1, 1], [], []>} : vector<24x128xf32>, vector<128x1xf32>, vector<24x1xf32> -> vector<24x1xf32>
    %c0_101 = arith.constant 0 : index
    %c0_102 = arith.constant 0 : index
    %168 = vector.load %arg30[%c0_101, %c0_102] : memref<1x1xf32, #tpu.memory_space<vmem>>, vector<1x1xf32>
    %169 = vector.broadcast %168 : vector<1x1xf32> to vector<24x1xf32>
    %170 = arith.addf %167, %169 : vector<24x1xf32>
    %cst_103 = arith.constant 0.000000e+00 : f32
    %171 = vector.broadcast %cst_103 : f32 to vector<24x3xf32>
    %172 = arith.cmpf ogt, %3, %171 : vector<24x3xf32>
    %cst_104 = arith.constant -1.000000e+30 : f32
    %173 = vector.shape_cast %170 : vector<24x1xf32> to vector<24x1xf32>
    %174 = vector.broadcast %173 : vector<24x1xf32> to vector<24x3xf32>
    %175 = vector.broadcast %cst_104 : f32 to vector<24x3xf32>
    %176 = arith.select %172, %174, %175 : vector<24x3xi1>, vector<24x3xf32>
    %cst_105 = arith.constant dense<0xFF800000> : vector<3xf32>
    %177 = vector.multi_reduction <maximumf>, %176, %cst_105 [0] : vector<24x3xf32> to vector<3xf32>
    %178 = vector.shape_cast %177 : vector<3xf32> to vector<1x3xf32>
    %cst_106 = arith.constant 0.000000e+00 : f32
    %179 = vector.broadcast %cst_106 : f32 to vector<24x3xf32>
    %180 = arith.cmpf ogt, %3, %179 : vector<24x3xf32>
    %cst_107 = arith.constant -1.000000e+30 : f32
    %181 = vector.shape_cast %178 : vector<1x3xf32> to vector<1x3xf32>
    %182 = vector.broadcast %181 : vector<1x3xf32> to vector<24x3xf32>
    %183 = vector.broadcast %cst_107 : f32 to vector<24x3xf32>
    %184 = arith.select %180, %182, %183 : vector<24x3xi1>, vector<24x3xf32>
    %cst_108 = arith.constant dense<0xFF800000> : vector<24xf32>
    %185 = vector.multi_reduction <maximumf>, %184, %cst_108 [1] : vector<24x3xf32> to vector<24xf32>
    %186 = vector.shape_cast %185 : vector<24xf32> to vector<24x1xf32>
    %187 = arith.subf %170, %186 : vector<24x1xf32>
    %188 = math.exp %187 : vector<24x1xf32>
    %189 = vector.broadcast %188 : vector<24x1xf32> to vector<24x128xf32>
    %190 = arith.mulf %165, %189 : vector<24x128xf32>
    %cst_109 = arith.constant dense<0.000000e+00> : vector<3x128xf32>
    %191 = tpu.matmul %3, %190, %cst_109 {dimension_numbers = #tpu.dot_dimension_numbers<[0], [0], [1], [1], [0, 1, 1, 1], [], []>} : vector<24x3xf32>, vector<24x128xf32>, vector<3x128xf32> -> vector<3x128xf32>
    %cst_110 = arith.constant dense<0.000000e+00> : vector<3x1xf32>
    %192 = tpu.matmul %3, %188, %cst_110 {dimension_numbers = #tpu.dot_dimension_numbers<[0], [0], [1], [1], [0, 1, 1, 1], [], []>} : vector<24x3xf32>, vector<24x1xf32>, vector<3x1xf32> -> vector<3x1xf32>
    %193 = tpu.reciprocal %192 {approx = true} : vector<3x1xf32> -> vector<3x1xf32>
    %194 = vector.broadcast %193 : vector<3x1xf32> to vector<3x128xf32>
    %195 = arith.mulf %191, %194 : vector<3x128xf32>
    %c0_111 = arith.constant 0 : index
    %c0_112 = arith.constant 0 : index
    %196 = vector.load %arg31[%c0_111, %c0_112] : memref<128x128xf32, #tpu.memory_space<vmem>>, vector<128x128xf32>
    %cst_113 = arith.constant dense<0.000000e+00> : vector<3x128xf32>
    %197 = tpu.matmul %195, %196, %cst_113 {dimension_numbers = #tpu.dot_dimension_numbers<[1], [0], [0], [1], [0, 0, 1, 1], [], []>} : vector<3x128xf32>, vector<128x128xf32>, vector<3x128xf32> -> vector<3x128xf32>
    %c0_114 = arith.constant 0 : index
    %c0_115 = arith.constant 0 : index
    %198 = vector.load %arg32[%c0_114, %c0_115] : memref<1x128xf32, #tpu.memory_space<vmem>>, vector<1x128xf32>
    %199 = vector.broadcast %198 : vector<1x128xf32> to vector<3x128xf32>
    %200 = arith.addf %197, %199 : vector<3x128xf32>
    %c0_116 = arith.constant 0 : index
    %c0_117 = arith.constant 0 : index
    %201 = vector.load %arg33[%c0_116, %c0_117] : memref<1x128xf32, #tpu.memory_space<vmem>>, vector<1x128xf32>
    %202 = vector.broadcast %201 : vector<1x128xf32> to vector<3x128xf32>
    %203 = arith.mulf %200, %202 : vector<3x128xf32>
    %c0_118 = arith.constant 0 : index
    %c0_119 = arith.constant 0 : index
    %204 = vector.load %arg34[%c0_118, %c0_119] : memref<1x128xf32, #tpu.memory_space<vmem>>, vector<1x128xf32>
    %205 = vector.broadcast %204 : vector<1x128xf32> to vector<3x128xf32>
    %206 = arith.addf %203, %205 : vector<3x128xf32>
    %cst_120 = arith.constant 0.000000e+00 : f32
    %207 = vector.broadcast %cst_120 : f32 to vector<3x128xf32>
    %208 = arith.maximumf %206, %207 : vector<3x128xf32>
    %c0_121 = arith.constant 0 : index
    %c0_122 = arith.constant 0 : index
    %209 = vector.load %arg35[%c0_121, %c0_122] : memref<128x64xf32, #tpu.memory_space<vmem>>, vector<128x64xf32>
    %cst_123 = arith.constant dense<0.000000e+00> : vector<3x64xf32>
    %210 = tpu.matmul %208, %209, %cst_123 {dimension_numbers = #tpu.dot_dimension_numbers<[1], [0], [0], [1], [0, 0, 1, 1], [], []>} : vector<3x128xf32>, vector<128x64xf32>, vector<3x64xf32> -> vector<3x64xf32>
    %c0_124 = arith.constant 0 : index
    %c0_125 = arith.constant 0 : index
    %211 = vector.load %arg36[%c0_124, %c0_125] : memref<1x64xf32, #tpu.memory_space<vmem>>, vector<1x64xf32>
    %212 = vector.broadcast %211 : vector<1x64xf32> to vector<3x64xf32>
    %213 = arith.addf %210, %212 : vector<3x64xf32>
    %c0_126 = arith.constant 0 : index
    %c0_127 = arith.constant 0 : index
    %214 = vector.load %arg37[%c0_126, %c0_127] : memref<1x64xf32, #tpu.memory_space<vmem>>, vector<1x64xf32>
    %215 = vector.broadcast %214 : vector<1x64xf32> to vector<3x64xf32>
    %216 = arith.mulf %213, %215 : vector<3x64xf32>
    %c0_128 = arith.constant 0 : index
    %c0_129 = arith.constant 0 : index
    %217 = vector.load %arg38[%c0_128, %c0_129] : memref<1x64xf32, #tpu.memory_space<vmem>>, vector<1x64xf32>
    %218 = vector.broadcast %217 : vector<1x64xf32> to vector<3x64xf32>
    %219 = arith.addf %216, %218 : vector<3x64xf32>
    %cst_130 = arith.constant 0.000000e+00 : f32
    %220 = vector.broadcast %cst_130 : f32 to vector<3x64xf32>
    %221 = arith.maximumf %219, %220 : vector<3x64xf32>
    %c0_131 = arith.constant 0 : index
    %c0_132 = arith.constant 0 : index
    %222 = vector.load %arg39[%c0_131, %c0_132] : memref<64x1xf32, #tpu.memory_space<vmem>>, vector<64x1xf32>
    %cst_133 = arith.constant dense<0.000000e+00> : vector<3x1xf32>
    %223 = tpu.matmul %221, %222, %cst_133 {dimension_numbers = #tpu.dot_dimension_numbers<[1], [0], [0], [1], [0, 0, 1, 1], [], []>} : vector<3x64xf32>, vector<64x1xf32>, vector<3x1xf32> -> vector<3x1xf32>
    %c0_134 = arith.constant 0 : index
    %c0_135 = arith.constant 0 : index
    %224 = vector.load %arg40[%c0_134, %c0_135] : memref<1x1xf32, #tpu.memory_space<vmem>>, vector<1x1xf32>
    %225 = vector.broadcast %224 : vector<1x1xf32> to vector<3x1xf32>
    %226 = arith.addf %223, %225 : vector<3x1xf32>
    %c0_136 = arith.constant 0 : index
    %c0_137 = arith.constant 0 : index
    %227 = vector.load %arg41[%c0_136, %c0_137] : memref<3x1xf32, #tpu.memory_space<vmem>>, vector<3x1xf32>
    tpu.vector_store %arg41[%c0_136, %c0_137], %226 {strides = array<i32>} : memref<3x1xf32, #tpu.memory_space<vmem>>, vector<3x1xf32>,
    return
  }
}

</mosaic_0001>

<bundles_post_ra>
// kernel: model_forward.1
= control target key start
LH: loop header
LB: loop body
LE: loop exit
PB: predicated region body
PF: predicated region fallthrough
CT: control target
= control target key end

     0   :  { %s1836_s6 = smov 1   ;;  %s1837_s10 = smov 2   ;;  %s2450_s0 = inlined_call_operand.smem [shape: u32[42], index: -1, kind: input, shape index: {}] }
   0x1   :  { %s1893_s5 = sld [smem:[%s2450_s0]]   ;;  %s1838_s14 = smov 3  }
   0x2   :  { %s1898_s9 = sld [smem:[%s2450_s0 + %s1836_s6]]   ;;  %s1839_s18 = smov 4  }
   0x3   :  { %s1903_s13 = sld [smem:[%s2450_s0 + %s1837_s10]]   ;;  %s1840_s22 = smov 5  }
   0x4   :  { %s1908_s17 = sld [smem:[%s2450_s0 + %s1838_s14]]   ;;  %s1841_s26 = smov 6  }
   0x5   :  { %s1913_s21 = sld [smem:[%s2450_s0 + %s1839_s18]]   ;;  %s1842_s30 = smov 7  }
   0x6   :  { %s1918_s25 = sld [smem:[%s2450_s0 + %s1840_s22]]   ;;  %s1843_s4 = smov 8  }
   0x7   :  { %s1923_s29 = sld [smem:[%s2450_s0 + %s1841_s26]]   ;;  %s1844_s10 = smov 9  }
   0x8   :  { %s1928_s3 = sld [smem:[%s2450_s0 + %s1842_s30]]   ;;  %s1845_s15 = smov 10  }
   0x9   :  { %s1933_s8 = sld [smem:[%s2450_s0 + %s1843_s4]]   ;;  %s1846_s20 = smov 11  }
   0xa   :  { %s1938_s14 = sld [smem:[%s2450_s0 + %s1844_s10]]   ;;  %s1847_s26 = smov 12  }
   0xb   :  { %2454 = sst [smem:[#allocation14_spill]] %s1913_s21  ;;  %s1848_s1 = smov 13  }
   0xc   :  { %s1943_s19 = sld [smem:[%s2450_s0 + %s1845_s15]]   ;;  %s1849_s7 = smov 14  }
   0xd   :  { %s1948_s24 = sld [smem:[%s2450_s0 + %s1846_s20]]   ;;  %s1850_s15 = smov 15  }
   0xe   :  { %s1953_s30 = sld [smem:[%s2450_s0 + %s1847_s26]]   ;;  %s1851_s22 = smov 16  }
   0xf   :  { %s1958_s6 = sld [smem:[%s2450_s0 + %s1848_s1]]   ;;  %s1852_s28 = smov 17  }
  0x10   :  { %s1963_s12 = sld [smem:[%s2450_s0 + %s1849_s7]]   ;;  %s1853_s7 = smov 18  }
  0x11   :  { %s1968_s20 = sld [smem:[%s2450_s0 + %s1850_s15]]   ;;  %s1854_s15 = smov 19  }
  0x12   :  { %2455 = sst [smem:[#allocation15_spill]] %s1943_s19  ;;  %s1866_s16 = smov 31  }
  0x13   :  { %2456 = sst [smem:[#allocation16_spill]] %s1948_s24  ;;  %s1867_s23 = smov 32  }
  0x14   :  { %2457 = sst [smem:[#allocation17_spill]] %s1953_s30  ;;  %s1868_s1 = smov 33  }
  0x15   :  { %2458 = sst [smem:[#allocation18_spill]] %s1958_s6  ;;  %s1869_s10 = smov 34  }
  0x16   :  { %2459 = sst [smem:[#allocation19_spill]] %s1963_s12 }
  0x17   :  { %2460 = sst [smem:[#allocation20_spill]] %s1968_s20 }
  0x18   :  { %s1973_s27 = sld [smem:[%s2450_s0 + %s1851_s22]]   ;;  %s1855_s22 = smov 20  }
  0x19   :  { %s1978_s4 = sld [smem:[%s2450_s0 + %s1852_s28]]   ;;  %s1856_s28 = smov 21  }
  0x1a   :  { %s1983_s21 = sld [smem:[%s2450_s0 + %s1853_s7]]   ;;  %s1857_s7 = smov 22  }
  0x1b   :  { %s1988_s20 = sld [smem:[%s2450_s0 + %s1854_s15]]   ;;  %s1858_s15 = smov 23  }
  0x1c   :  { %s1998_s12 = sld [smem:[%s2450_s0 + %s1856_s28]]   ;;  %s1860_s28 = smov 25  }
  0x1d   :  { %s2061_s6 = sld [smem:[%s2450_s0 + %s1869_s10]]   ;;  %s1873_s10 = smov 38  }
  0x1e   :  { %2461 = sst [smem:[#allocation21_spill]] %s1973_s27 }
  0x1f   :  { %s1993_s27 = sld [smem:[%s2450_s0 + %s1855_s22]]   ;;  %s1859_s22 = smov 24  }
  0x20   :  { %2462 = sst [smem:[#allocation22_spill]] %s1983_s21 }
  0x21   :  { %2463 = sst [smem:[#allocation23_spill]] %s1988_s20 }
  0x22   :  { %2465 = sst [smem:[#allocation25_spill]] %s1998_s12 }
  0x23   :  { %s2003_s21 = sld [smem:[%s2450_s0 + %s1857_s7]]   ;;  %s1861_s7 = smov 26  }
  0x24   :  { %s2008_s20 = sld [smem:[%s2450_s0 + %s1858_s15]]   ;;  %s1862_s15 = smov 27  }
  0x25   :  { %2464 = sst [smem:[#allocation24_spill]] %s1993_s27 }
  0x26   :  { %s2013_s27 = sld [smem:[%s2450_s0 + %s1859_s22]]   ;;  %s1863_s22 = smov 28  }
  0x27   :  { %s2018_s12 = sld [smem:[%s2450_s0 + %s1860_s28]]   ;;  %s1864_s28 = smov 29  }
  0x28   :  { %s2028_s30 = sld [smem:[%s2450_s0 + %s1862_s15]]   ;;  %s1874_s15 = smov 39  }
  0x29   :  { %2466 = sst [smem:[#allocation26_spill]] %s2003_s21 }
  0x2a   :  { %s2023_s21 = sld [smem:[%s2450_s0 + %s1861_s7]]   ;;  %s1865_s7 = smov 30  }
  0x2b   :  { %s2038_s24 = sld [smem:[%s2450_s0 + %s1864_s28]]  }
  0x2c   :  { %2467 = sst [smem:[#allocation27_spill]] %s2013_s27 }
  0x2d   :  { %s2033_s27 = sld [smem:[%s2450_s0 + %s1863_s22]]  }
  0x2e   :  { %2469 = sst [smem:[#allocation29_spill]] %s2028_s30 }
  0x2f   :  { %s2046_s30 = sld [smem:[%s2450_s0 + %s1866_s16]]   ;;  %s1870_s16 = smov 35  }
  0x30   :  { %2468 = sst [smem:[#allocation28_spill]] %s2023_s21 }
  0x31   :  { %2471 = sst [smem:[#allocation31_spill]] %s2038_s24 }
  0x32   :  { %s1546_s21 = sld [smem:[%s2450_s0 + %s1865_s7]]  }
  0x33   :  { %2470 = sst [smem:[#allocation30_spill]] %s2033_s27 }
  0x34   :  { %s2051_s27 = sld [smem:[%s2450_s0 + %s1867_s23]]   ;;  %s1871_s23 = smov 36  }
  0x35   :  { %s2056_s24 = sld [smem:[%s2450_s0 + %s1868_s1]]   ;;  %s1872_s1 = smov 37  }
  0x36   :  { %2474 = sst [smem:[#allocation34_spill]] %s2061_s6 }
  0x37   :  { %s2066_s19 = sld [smem:[%s2450_s0 + %s1870_s16]]  }
  0x38   :  { %v88_v0 = vstv %s1546_s21  ;;  %s2076_s7 = sld [smem:[%s2450_s0 + %s1872_s1]]   ;;  %s1875_s21 = smov 41  }
  0x39   :  { %89 = vst [vmem:[#allocation2] sm:$0x1] %v88_v0  ;;  %s2081_s16 = sld [smem:[%s2450_s0 + %s1873_s10]]   ;;  %s1876_s1 = smov 40  }
  0x3a   :  { %2472 = sst [smem:[#allocation32_spill]] %s2051_s27 }
  0x3b   :  { %2473 = sst [smem:[#allocation33_spill]] %s2056_s24 }
  0x3c   :  { %s2071_s27 = sld [smem:[%s2450_s0 + %s1871_s23]]  }
  0x3d   :  { %s2086_s23 = sld [smem:[%s2450_s0 + %s1874_s15]]  }
  0x3e   :  { %2476 = sst [smem:[#allocation36_spill]] %s2076_s7 }
  0x3f   :  { %s2091_s28 = sld [smem:[%s2450_s0 + %s1875_s21]]  }
  0x42   :  { %2475 = sst [smem:[#allocation35_spill]] %s2071_s27 }
  0x43   :  { %s1556_s27 = sld [smem:[%s2450_s0 + %s1876_s1]]  }
  0x49   :  { %v90_v1 = vstv %s1556_s27 }
  0x4a   :  { %91 = vst [vmem:[#allocation3] sm:$0x1] %v90_v1 }
  0x4b   :  { %92 = vsyncpa [#allocation5], 0 }
  0x4c   :  { %93 = vsyncpa [#allocation7], 0 }
  0x4d   :  { %94 = vsyncpa [#allocation10], 0  ;;  %s156_s24 = sshll.u32 %s2008_s20, 4  ;;  %s1877_s6 = smov [#allocation6]   ;;  %s157_s24 = int_to_ptr.hbm [resolvable:$true] %s156_s24 }
  0x4e   :  { %s158_s10 = sshll.u32 %s1877_s6, 4  ;;  %s133_s11 = sshll.u32 %s1978_s4, 4  ;;  %s159_s10 = int_to_ptr.vmem [resolvable:$true] %s158_s10  ;;  %s134_s11 = int_to_ptr.hbm [resolvable:$true] %s133_s11 }
  0x4f   :  { %s1734_s15 = sshra.s32 %s157_s24, 4  ;;  %s1738_s0 = scalar_lea.hbm %s2008_s20, 128  ;;  %s1735_s15 = int_to_ptr.hbm [resolvable:$true] %s1734_s15 }
  0x50   :  { %s1736_s18 = scalar_lea.hbm %s1735_s15, 128  ;;  %p1739_p1 = scmp.lt.s32.totalorder %s1735_s15, %s2008_s20 }
  0x51   :  { %p1737_p0 = scmp.ne.s32.totalorder %s1735_s15, %s1736_s18  ;;  %p1740_p2 = scmp.lt.s32.totalorder %s1738_s0, %s1736_s18 }
  0x53   :  { %p1741_p3 = por %p1740_p2, %p1739_p1 }
  0x55   :  { %p1742_p4 = pnand %p1741_p3, %p1737_p0 }
  0x57   :  { %1745 = shalt.err (!%p1742_p4)
}
  0x58   :  { %s1878_s27 = smov 128   ;;  %s1879_s7 = smov 8  }
  0x59   :  { %164 = dma.hbm_to_vmem [thread:$0]  %s157_s24, 2048, %s159_s10, [#allocation7], %s1878_s27, %s1878_s27, %s1879_s7  }
  0x5a   :  { %s1880_s21 = smov [#allocation4]   ;;  %s171_s26 = sshll.u32 %s2018_s12, 4  ;;  %s2104_s26 = int_to_ptr.hbm [resolvable:$true] %s171_s26 }
  0x5b   :  { %s135_s22 = sshll.u32 %s1880_s21, 4  ;;  %s1758_s20 = sshra.s32 %s134_s11, 4  ;;  %s136_s22 = int_to_ptr.vmem [resolvable:$true] %s135_s22  ;;  %s1759_s20 = int_to_ptr.hbm [resolvable:$true] %s1758_s20 }
  0x5c   :  { %s1760_s1 = scalar_lea.hbm %s1759_s20, 128  ;;  %s1762_s2 = scalar_lea.hbm %s1978_s4, 128 }
  0x5d   :  { %p1761_p5 = scmp.ne.s32.totalorder %s1759_s20, %s1760_s1  ;;  %p1763_p6 = scmp.lt.s32.totalorder %s1759_s20, %s1978_s4 }
  0x5e   :  { %p1764_p7 = scmp.lt.s32.totalorder %s1762_s2, %s1760_s1 }
  0x60   :  { %p1765_p8 = por %p1764_p7, %p1763_p6 }
  0x62   :  { %p1766_p9 = pnand %p1765_p8, %p1761_p5 }
  0x64   :  { %1769 = shalt.err (!%p1766_p9)
}
  0x65   :  { %141 = dma.hbm_to_vmem [thread:$0]  %s134_s11, 2048, %s136_s22, [#allocation5], %s1878_s27, %s1878_s27, %s1879_s7  }
  0x66   :  { %s194_s24 = sshll.u32 %s2046_s30, 4  ;;  %s1881_s6 = smov [#allocation8]   ;;  %s2112_s24 = int_to_ptr.hbm [resolvable:$true] %s194_s24 }
  0x67   :  { %s173_s10 = sshll.u32 %s1881_s6, 4  ;;  %s1782_s15 = sshra.s32 %s2104_s26, 4  ;;  %s174_s10 = int_to_ptr.vmem [resolvable:$true] %s173_s10  ;;  %s1783_s15 = int_to_ptr.hbm [resolvable:$true] %s1782_s15 }
  0x68   :  { %s1784_s4 = scalar_lea.hbm %s1783_s15, 128  ;;  %s1786_s18 = scalar_lea.hbm %s2018_s12, 128 }
  0x69   :  { %p1785_p10 = scmp.ne.s32.totalorder %s1783_s15, %s1784_s4  ;;  %p1787_p11 = scmp.lt.s32.totalorder %s1783_s15, %s2018_s12 }
  0x6a   :  { %p1788_p12 = scmp.lt.s32.totalorder %s1786_s18, %s1784_s4 }
  0x6c   :  { %p1789_p13 = por %p1788_p12, %p1787_p11 }
  0x6e   :  { %p1790_p0 = pnand %p1789_p13, %p1785_p10 }
  0x70   :  { %1793 = shalt.err (!%p1790_p0)
}
  0x71   :  { %179 = dma.hbm_to_vmem [thread:$0]  %s2104_s26, 2048, %s174_s10, [#allocation7], %s1878_s27, %s1878_s27, %s1879_s7  }
  0x72   :  { %s1882_s11 = smov [#allocation9]   ;;  %s1806_s21 = sshra.s32 %s2112_s24, 4  ;;  %s1807_s21 = int_to_ptr.hbm [resolvable:$true] %s1806_s21 }
  0x73   :  { %s196_s0 = sshll.u32 %s1882_s11, 4  ;;  %s1808_s22 = scalar_lea.hbm %s1807_s21, 128  ;;  %s197_s0 = int_to_ptr.vmem [resolvable:$true] %s196_s0 }
  0x74   :  { %p1809_p1 = scmp.ne.s32.totalorder %s1807_s21, %s1808_s22  ;;  %s1810_s12 = scalar_lea.hbm %s2046_s30, 128 }
  0x75   :  { %p1811_p2 = scmp.lt.s32.totalorder %s1807_s21, %s2046_s30  ;;  %p1812_p3 = scmp.lt.s32.totalorder %s1810_s12, %s1808_s22 }
  0x77   :  { %p1813_p4 = por %p1812_p3, %p1811_p2 }
  0x79   :  { %p1814_p5 = pnand %p1813_p4, %p1809_p1 }
  0x7b   :  { %1817 = shalt.err (!%p1814_p5)
}
  0x7c   :  { %202 = dma.hbm_to_vmem [thread:$0]  %s2112_s24, 2048, %s197_s0, [#allocation10], %s1878_s27, %s1878_s27, %s1879_s7  }
  0x7d   :  { %1830 = dma.done.wait [#allocation5], 2048  }
  0x7e   :  { %1831 = vsyncadd [#allocation5], 4294965248 }
  0x7f   :  { %1832 = dma.done.wait [#allocation7], 4096  }
  0x80   :  { %1833 = vsyncadd [#allocation7], 4294963200 }
  0x81   :  { %1834 = dma.done.wait [#allocation10], 2048  }
  0x82   :  { %1835 = vsyncadd [#allocation10], 4294965248  ;;  %vm269_vm0 = vcmask 64512   ;;  %v2129_v2 = vld [vmem:[%s1893_s5 + $0x10] sm:$0xff]  ;;  %vm348_vm1 = vcmask 1043456   ;;  %v1624_v3 = vld [vmem:[%s1908_s17] sm:$0xff] }
  0x83   :  { %v264_v4 = vld [vmem:[%s1918_s25] sm:$0xff]  ;;  %v263_v5 = vpack.c.bf16 %v2129_v2, %v2129_v2  ;;  %v2139_v7 = vld [vmem:[%s1893_s5 + $0x8] sm:$0xff]  ;;  %403 = vxpose.xlu0.c.b16.start [1/3] (short) (narrow) %v1624_v3, 32  ;;  %vm338_vm2 = vcmask 195584   ;;  %v2161_v14 = vld [vmem:[%s1898_s9 + $0x10] sm:$0xff]  ;;  %vm419_vm3 = vcmask 392192  }
  0x84   :  { %303 = vmatpush.msra.mxu0 %v264_v4  ;;  %v2136_v6 = vld [vmem:[%s1893_s5] sm:$0xff]  ;;  %v2153_v12 = vld [vmem:[%s1898_s9 + $0x8] sm:$0xff]  ;;  %v2169_v16 = vld [vmem:[%s1898_s9 + $0x18] sm:$0xff]  ;;  %vm453_vm4 = vcmask 130048   ;;  %s2477_s5 = sld [smem:[#allocation15_spill]] }
  0x85   :  { %v2142_v8 = vld [vmem:[%s1898_s9] sm:$0xff]  ;;  %v350_v9 = vsel %vm348_vm1, %v263_v5, 0  ;;  %v262_v10 = vpack.c.bf16 %v2139_v7, %v2136_v6  ;;  %v1625_v13 = vld [vmem:[%s1908_s17 + $0x8] sm:$0xff]  ;;  %v1626_v17 = vld [vmem:[%s1908_s17 + $0x10] sm:$0xff]  ;;  %s2480_s17 = sld [smem:[#allocation17_spill]] }
  0x86   :  { %1558 = vmatmul.msk.f32.vlgmr.msra.gmra.mxu0 %vm269_vm0, %v2142_v8  ;;  %358 = vmatpush.bf16.msra.mxu1 %v350_v9  ;;  %v2150_v11 = vld [vmem:[%s1903_s13] sm:$0xff]  ;;  %v2166_v15 = vld [vmem:[%s1903_s13 + $0x8] sm:$0xff]  ;;  %v2182_v19 = vld [vmem:[%s1903_s13 + $0x10] sm:$0xff]  ;;  %s2479_s13 = sld [smem:[#allocation16_spill]] }
  0x87   :  { %v2177_v18 = vld [vmem:[%s1898_s9 + $0x20] sm:$0xff]  ;;  %v2185_v20 = vld [vmem:[%s1898_s9 + $0x28] sm:$0xff]  ;;  %v507_v59 = vld [vmem:[%s1938_s14 + $0x78] sm:$0xff]  ;;  %s2478_s9 = sld [smem:[#allocation18_spill]] }
  0x88   :  { %v1683_v31 = vld [vmem:[%s1923_s29] ss:$0 sm:$0xff]  ;;  %v448_v57 = vld [vmem:[%s1928_s3 + $0x8] sm:$0xff]  ;;  %v506_v60 = vld [vmem:[%s1938_s14 + $0x70] sm:$0xff]  ;;  %s2481_s25 = sld [smem:[#allocation19_spill]] }
  0x89   :  { %477 = vmatpush.msra.mxu3 %v448_v57  ;;  %v447_v58 = vld [vmem:[%s1928_s3] sm:$0xff]  ;;  %v505_v61 = vld [vmem:[%s1938_s14 + $0x68] sm:$0xff]  ;;  %v503_v63 = vld [vmem:[%s1938_s14 + $0x58] sm:$0xff]  ;;  %s2482_s29 = sld [smem:[#allocation20_spill]] }
  0x8a   :  { %359 = vmatpush.bf16.msra.mxu1 %v262_v10  ;;  %v504_v62 = vld [vmem:[%s1938_s14 + $0x60] sm:$0xff]  ;;  %v502_v0 = vld [vmem:[%s1938_s14 + $0x50] sm:$0xff]  ;;  %v501_v1 = vld [vmem:[%s1938_s14 + $0x48] sm:$0xff]  ;;  %s2483_s3 = sld [smem:[#allocation21_spill]] }
  0x8b   :  { %478 = vmatpush.msra.mxu3 %v447_v58  ;;  %v500_v3 = vld [vmem:[%s1938_s14 + $0x40] sm:$0xff]  ;;  %v499_v9 = vld [vmem:[%s1938_s14 + $0x38] sm:$0xff]  ;;  %v498_v10 = vld [vmem:[%s1938_s14 + $0x30] sm:$0xff]  ;;  %s2486_s30 = sld [smem:[#allocation23_spill]] }
  0x8c   :  { %s2487_s27 = sld [smem:[#allocation24_spill]] }
  0x8d   :  { %1576 = vmatmul.msk.bf16.vlgmr.msra.gmra.mxu1 %vm338_vm2, %v2150_v11  ;;  %512 = vmatpush.msrb.mxu3 %v507_v59  ;;  %s2488_s7 = sld [smem:[#allocation26_spill]] }
  0x8e   :  { %1559 = vmatmul.msk.f32.gmra.mxu0 %vm269_vm0, %v2153_v12  ;;  %s2489_s26 = sld [smem:[#allocation27_spill]] }
  0x8f   :  { %513 = vmatpush.msrb.mxu3 %v506_v60  ;;  %s2490_s20 = sld [smem:[#allocation28_spill]] }
  0x90   :  { %s2491_s1 = sld [smem:[#allocation31_spill]] }
  0x91   :  { %514 = vmatpush.msrb.mxu3 %v505_v61  ;;  %s2492_s2 = sld [smem:[#allocation29_spill]] }
  0x92   :  { %s2493_s24 = sld [smem:[#allocation30_spill]] }
  0x93   :  { %404 = vxpose.xlu0.c.b16.cont [2/3] (short) (narrow) %v1625_v13, 32  ;;  %515 = vmatpush.msrb.mxu3 %v504_v62  ;;  %v497_v13 = vld [vmem:[%s1938_s14 + $0x28] sm:$0xff]  ;;  %s2494_s6 = sld [smem:[#allocation14_spill]] }
  0x94   :  { %s2495_s10 = sld [smem:[#allocation32_spill]] }
  0x95   :  { %516 = vmatpush.msrb.mxu3 %v503_v63  ;;  %s2496_s15 = sld [smem:[#allocation33_spill]] }
  0x96   :  { %1560 = vmatmul.msk.f32.gmra.mxu0 %vm269_vm0, %v2161_v14  ;;  %s2497_s4 = sld [smem:[#allocation34_spill]] }
  0x97   :  { %517 = vmatpush.msrb.mxu3 %v502_v0  ;;  %s2498_s18 = sld [smem:[#allocation35_spill]] }
  0x98   :  { %s2499_s11 = sld [smem:[#allocation36_spill]] }
  0x99   :  { %518 = vmatpush.msrb.mxu3 %v501_v1 }
  0x9b   :  { %519 = vmatpush.msrb.mxu3 %v500_v3 }
  0x9d   :  { %1577 = vmatmul.msk.bf16.gmra.mxu1 %vm338_vm2, %v2166_v15  ;;  %520 = vmatpush.msrb.mxu3 %v499_v9 }
  0x9e   :  { %1561 = vmatmul.msk.f32.gmra.mxu0 %vm269_vm0, %v2169_v16 }
  0x9f   :  { %521 = vmatpush.msrb.mxu3 %v498_v10 }
  0xa1   :  { %522 = vmatpush.msrb.mxu3 %v497_v13 }
  0xa3   :  { %405 = vxpose.xlu0.c.b16.end [3/3] (short) (narrow) %v1626_v17, 32 }
  0xa6   :  { %1562 = vmatmul.msk.f32.gmra.mxu0 %vm269_vm0, %v2177_v18 }
  0xad   :  { %1578 = vmatmul.msk.bf16.gmra.mxu1 %vm338_vm2, %v2182_v19 }
  0xae   :  { %1563 = vmatmul.msk.f32.gmra.mxu0 %vm269_vm0, %v2185_v20 }
 0x103   :  { %v305_v21 = vpop.f32.mrf.mxu0 }
 0x104   :  { %v306_v42 = vadd.f32 %v1683_v31, %v305_v21  ;;  %v496_v21 = vld [vmem:[%s1938_s14 + $0x20] sm:$0xff] }
 0x105   :  { %523 = vmatpush.msrb.mxu3 %v496_v21 }
 0x10a   :  { %v361_v23 = vpop.f32.mrf.mxu1 }
 0x10b   :  { %v308_v22 = vpop.f32.mrf.mxu0  ;;  %v362_v50 = vadd.f32 %v361_v23, %v306_v42 }
 0x10c   :  { %v309_v39 = vadd.f32 %v1683_v31, %v308_v22 }
 0x10d   :  { %v376_v54 = vmax.f32 %v362_v50, 0.0 }
 0x112   :  { %v363_v25 = vpop.f32.mrf.mxu1 }
 0x113   :  { %v311_v24 = vpop.f32.mrf.mxu0  ;;  %v364_v46 = vadd.f32 %v363_v25, %v309_v39 }
 0x114   :  { %v312_v36 = vadd.f32 %v1683_v31, %v311_v24  ;;  %v495_v24 = vld [vmem:[%s1938_s14 + $0x18] sm:$0xff] }
 0x115   :  { %v377_v52 = vmax.f32 %v364_v46, 0.0  ;;  %524 = vmatpush.msrb.mxu3 %v495_v24 }
 0x117   :  { %v382_v55 = vpack.c.bf16 %v377_v52, %v376_v54 }
 0x11a   :  { %v366_v27 = vpop.f32.mrf.mxu1 }
 0x11b   :  { %v314_v26 = vpop.f32.mrf.mxu0  ;;  %v367_v43 = vadd.f32 %v366_v27, %v312_v36  ;;  %v493_v27 = vld [vmem:[%s1938_s14 + $0x8] sm:$0xff] }
 0x11c   :  { %v315_v34 = vadd.f32 %v1683_v31, %v314_v26  ;;  %v494_v26 = vld [vmem:[%s1938_s14 + $0x10] sm:$0xff] }
 0x11d   :  { %v378_v51 = vmax.f32 %v367_v43, 0.0  ;;  %525 = vmatpush.msrb.mxu3 %v494_v26 }
 0x11f   :  { %526 = vmatpush.msrb.mxu3 %v493_v27 }
 0x122   :  { %v368_v28 = vpop.f32.mrf.mxu1 }
 0x123   :  { %v317_v29 = vpop.f32.mrf.mxu0  ;;  %v369_v40 = vadd.f32 %v368_v28, %v315_v34  ;;  %v492_v28 = vld [vmem:[%s1938_s14] sm:$0xff]  ;;  %s2485_s14 = sld [smem:[#allocation25_spill]] }
 0x124   :  { %v318_v33 = vadd.f32 %v1683_v31, %v317_v29  ;;  %527 = vmatpush.msrb.mxu3 %v492_v28  ;;  %v1684_v29 = vld [vmem:[%s1933_s8] ss:$0 sm:$0xff]  ;;  %s2484_s8 = sld [smem:[#allocation22_spill]] }
 0x125   :  { %v379_v47 = vmax.f32 %v369_v40, 0.0 }
 0x127   :  { %v383_v53 = vpack.c.bf16 %v379_v47, %v378_v51 }
 0x12a   :  { %v371_v30 = vpop.f32.mrf.mxu1 }
 0x12b   :  { %v320_v32 = vpop.f32.mrf.mxu0  ;;  %v372_v37 = vadd.f32 %v371_v30, %v318_v33 }
 0x12c   :  { %v321_v35 = vadd.f32 %v1683_v31, %v320_v32 }
 0x12d   :  { %v380_v44 = vmax.f32 %v372_v37, 0.0 }
 0x12f   :  { %v2192_v49 = vpop.trf.xlu0 }
 0x132   :  { %v373_v38 = vpop.f32.mrf.mxu1 }
 0x133   :  { %v374_v41 = vadd.f32 %v373_v38, %v321_v35  ;;  %v1685_v38 = vld [vmem:[%s2477_s5] ss:$0 sm:$0xff] }
 0x135   :  { %v381_v45 = vmax.f32 %v374_v41, 0.0 }
 0x137   :  { %v384_v48 = vpack.c.bf16 %v381_v45, %v380_v44  ;;  %v1883_v44 = vmov 128.0  }
 0x138   :  { %1706 = vrcp.f32 %v1883_v44 }
 0x139   :  { %431 = vmatpush.bf16.msrb.mxu1 %v384_v48  ;;  %1627 = vmatpush.bf16.msra.mxu2 %v384_v48 }
 0x13d   :  { %432 = vmatpush.bf16.msrb.mxu1 %v383_v53  ;;  %1628 = vmatpush.bf16.msra.mxu2 %v383_v53 }
 0x13e   :  { %v1707_v45 = vpop.eup %1706 }
 0x13f   :  { %v2194_v56 = vpop.trf.xlu0  ;;  %v545_v46 = vmul.f32 128.0, %v1707_v45  ;;  %vm549_vm5 = vweird.f32 %v1707_v45 }
 0x141   :  { %433 = vmatpush.bf16.msrb.mxu1 %v382_v55  ;;  %1629 = vmatpush.bf16.msra.mxu2 %v382_v55  ;;  %v546_v47 = vsub.f32 1.0, %v545_v46 }
 0x143   :  { %v547_v48 = vmul.f32 %v1707_v45, %v546_v47 }
 0x144   :  { %1591 = vmatmul.msk.bf16.vlgmr.msrb.gmra.mxu1 %vm419_vm3, %v2192_v49  ;;  %1592 = vmatmul.msk.bf16.vlgmr.msra.gmra.mxu2 %vm419_vm3, %v2194_v56 }
 0x145   :  { %v548_v50 = vadd.f32 %v1707_v45, %v547_v48 }
 0x147   :  { %v2226_v51 = vsel %vm549_vm5, %v1707_v45, %v548_v50 }
 0x1c1   :  { %v435_v4 = vpop.f32.mrf.mxu1 }
 0x1c2   :  { %v444_v5 = vadd.f32 %v435_v4, %v2136_v6  ;;  %v624_v4 = vld [vmem:[%s2478_s9] sm:$0xff] }
 0x1c3   :  { %644 = vmatpush.msrb.mxu2 %v624_v4 }
 0x1c4   :  { %1593 = vmatmul.msk.f32.vlgmr.msra.gmra.mxu3 %vm453_vm4, %v444_v5  ;;  %1596 = vmatmul.msk.f32.vlgmr.msrb.gmra.mxu2 %vm269_vm0, %v2142_v8 }
 0x1c7   :  { %v440_v17 = vpop.f32.mrf.mxu2 }
 0x1c8   :  { %v446_v25 = vadd.f32 %v440_v17, %v2129_v2 }
 0x1c9   :  { %v437_v22 = vpop.f32.mrf.mxu1 }
 0x1ca   :  { %v445_v23 = vadd.f32 %v437_v22, %v2139_v7 }
 0x1cc   :  { %1594 = vmatmul.msk.f32.gmra.mxu3 %vm453_vm4, %v445_v23  ;;  %1597 = vmatmul.msk.f32.gmra.mxu2 %vm269_vm0, %v2153_v12 }
 0x1cf   :  { %v442_v6 = vpop.f32.mrf.mxu2 }
 0x1d4   :  { %1595 = vmatmul.msk.f32.gmra.mxu3 %vm453_vm4, %v446_v25  ;;  %1598 = vmatmul.msk.f32.gmra.mxu2 %vm269_vm0, %v2161_v14 }
 0x1dc   :  { %1599 = vmatmul.msk.f32.gmra.mxu2 %vm269_vm0, %v2169_v16 }
 0x1e4   :  { %1600 = vmatmul.msk.f32.gmra.mxu2 %vm269_vm0, %v2177_v18 }
 0x1ec   :  { %1601 = vmatmul.msk.f32.gmra.mxu2 %vm269_vm0, %v2185_v20 }
 0x247   :  { %v480_v30 = vpop.f32.mrf.mxu3 }
 0x248   :  { %v481_v7 = vadd.f32 %v1684_v29, %v480_v30 }
 0x24a   :  { %v489_v31 = vmax.f32 %v481_v7, 0.0 }
 0x24c   :  { %528 = vmatmul.f32.vlgmr.msrb.gmra.mxu3 %v489_v31  ;;  %v1686_v31 = vld [vmem:[%s2479_s13] ss:$0 sm:$0xff] }
 0x24f   :  { %v483_v32 = vpop.f32.mrf.mxu3 }
 0x250   :  { %v484_v33 = vadd.f32 %v1684_v29, %v483_v32 }
 0x252   :  { %v490_v34 = vmax.f32 %v484_v33, 0.0 }
 0x254   :  { %531 = vmatmul.f32.gmra.mxu3 %v490_v34 }
 0x257   :  { %v486_v35 = vpop.f32.mrf.mxu3 }
 0x258   :  { %v487_v2 = vadd.f32 %v1684_v29, %v486_v35 }
 0x25a   :  { %v491_v36 = vmax.f32 %v487_v2, 0.0  ;;  %v1687_v2 = vld [vmem:[%s2480_s17] ss:$0 sm:$0xff] }
 0x25c   :  { %534 = vmatmul.f32.gmra.mxu3 %v491_v36 }
 0x2cf   :  { %v529_v37 = vpop.f32.mrf.mxu3 }
 0x2d0   :  { %v530_v43 = vadd.f32 %v1685_v38, %v529_v37 }
 0x2d7   :  { %v532_v39 = vpop.f32.mrf.mxu3 }
 0x2d8   :  { %v533_v40 = vadd.f32 %v1685_v38, %v532_v39 }
 0x2da   :  { %540 = vadd.xlane.f32.xlu2 %v533_v40 }
 0x2df   :  { %v535_v41 = vpop.f32.mrf.mxu3 }
 0x2e0   :  { %v536_v42 = vadd.f32 %v1685_v38, %v535_v41 }
 0x2e2   :  { %542 = vadd.xlane.f32.xlu1 %v536_v42 }
 0x2ea   :  { %538 = vadd.xlane.f32.xlu1 %v530_v43 }
 0x34d   :  { %v541_v54 = vpop.xlane.xlu2 %540 }
 0x34e   :  { %v552_v57 = vmul.f32 %v2226_v51, %v541_v54 }
 0x350   :  { %v2230_v60 = vsub.f32 %v533_v40, %v552_v57 }
 0x352   :  { %v558_v0 = vmul.f32 %v2230_v60, %v2230_v60 }
 0x355   :  { %v543_v52 = vpop.xlane.xlu1 %542 }
 0x356   :  { %v553_v53 = vmul.f32 %v2226_v51, %v543_v52 }
 0x358   :  { %v556_v55 = vsub.f32 %v536_v42, %v553_v53 }
 0x35a   :  { %v559_v58 = vmul.f32 %v556_v55, %v556_v55 }
 0x35c   :  { %564 = vadd.xlane.f32.xlu2 %v559_v58 }
 0x35d   :  { %v539_v59 = vpop.xlane.xlu1 %538 }
 0x35e   :  { %v551_v61 = vmul.f32 %v2226_v51, %v539_v59 }
 0x360   :  { %v554_v62 = vsub.f32 %v530_v43, %v551_v61 }
 0x362   :  { %v557_v63 = vmul.f32 %v554_v62, %v554_v62 }
 0x364   :  { %560 = vadd.xlane.f32.xlu1 %v557_v63  ;;  %562 = vadd.xlane.f32.xlu2 %v558_v0 }
 0x3cf   :  { %v565_v1 = vpop.xlane.xlu2 %564 }
 0x3d0   :  { %v568_v3 = vmul.f32 %v565_v1, %v2226_v51 }
 0x3d2   :  { %v571_v5 = vadd.f32 1e-05, %v568_v3 }
 0x3d4   :  { %1708 = vrsqrt.f32 %v571_v5  ;;  %vm598_vm7 = vweird.f32 %v571_v5 }
 0x3d7   :  { %v561_v9 = vpop.xlane.xlu1 %560  ;;  %v563_v10 = vpop.xlane.xlu2 %562 }
 0x3d8   :  { %v566_v13 = vmul.f32 %v561_v9, %v2226_v51  ;;  %v567_v17 = vmul.f32 %v563_v10, %v2226_v51 }
 0x3da   :  { %v1709_v21 = vpop.eup %1708  ;;  %v569_v22 = vadd.f32 1e-05, %v566_v13  ;;  %v570_v23 = vadd.f32 1e-05, %v567_v17  ;;  %v1688_v13 = vld [vmem:[%s2481_s25] ss:$0 sm:$0xff] }
 0x3db   :  { %v593_v24 = vmul.f32 %v1709_v21, %v571_v5  ;;  %vm599_vm6 = vweird.f32 %v1709_v21 }
 0x3dc   :  { %1710 = vrsqrt.f32 %v569_v22  ;;  %vm600_vm8 = vmor %vm598_vm7, %vm599_vm6  ;;  %vm578_vm11 = vweird.f32 %v569_v22  ;;  %vm588_vm13 = vweird.f32 %v570_v23 }
 0x3dd   :  { %v594_v6 = vmul.f32 %v1709_v21, %v593_v24  ;;  %1712 = vrsqrt.f32 %v570_v23 }
 0x3df   :  { %v595_v25 = vmul.f32 0.5, %v594_v6 }
 0x3e1   :  { %v596_v26 = vsub.f32 1.5, %v595_v25 }
 0x3e2   :  { %v1711_v27 = vpop.eup %1710 }
 0x3e3   :  { %v1713_v28 = vpop.eup %1712  ;;  %v597_v29 = vmul.f32 %v1709_v21, %v596_v26  ;;  %v573_v30 = vmul.f32 %v1711_v27, %v569_v22  ;;  %vm579_vm9 = vweird.f32 %v1711_v27 }
 0x3e4   :  { %v583_v7 = vmul.f32 %v1713_v28, %v570_v23  ;;  %vm589_vm10 = vweird.f32 %v1713_v28  ;;  %vm580_vm12 = vmor %vm578_vm11, %vm579_vm9 }
 0x3e5   :  { %v601_v32 = vsel %vm600_vm8, %v1709_v21, %v597_v29  ;;  %v574_v33 = vmul.f32 %v1711_v27, %v573_v30  ;;  %vm590_vm14 = vmor %vm588_vm13, %vm589_vm10  ;;  %v736_v29 = vld [vmem:[%s2482_s29 + $0x78] sm:$0xff]  ;;  %v735_v30 = vld [vmem:[%s2482_s29 + $0x70] sm:$0xff] }
 0x3e6   :  { %v604_v34 = vmul.f32 %v601_v32, %v556_v55  ;;  %v584_v35 = vmul.f32 %v1713_v28, %v583_v7  ;;  %741 = vmatpush.msra.mxu3 %v736_v29  ;;  %v772_v29 = vld [vmem:[#allocation4 + $0x10] sm:$0xff] }
 0x3e7   :  { %v575_v36 = vmul.f32 0.5, %v574_v33 }
 0x3e8   :  { %v585_v37 = vmul.f32 0.5, %v584_v35  ;;  %v611_v38 = vmul.f32 %v1686_v31, %v604_v34  ;;  %v734_v34 = vld [vmem:[%s2482_s29 + $0x68] sm:$0xff]  ;;  %742 = vmatpush.msra.mxu3 %v735_v30 }
 0x3e9   :  { %v576_v39 = vsub.f32 1.5, %v575_v36  ;;  %v771_v30 = vld [vmem:[#allocation4 + $0x8] sm:$0xff] }
 0x3ea   :  { %v586_v40 = vsub.f32 1.5, %v585_v37  ;;  %v618_v41 = vadd.f32 %v1687_v2, %v611_v38  ;;  %v733_v37 = vld [vmem:[%s2482_s29 + $0x60] sm:$0xff]  ;;  %743 = vmatpush.msra.mxu3 %v734_v34 }
 0x3eb   :  { %v577_v42 = vmul.f32 %v1711_v27, %v576_v39 }
 0x3ec   :  { %v587_v43 = vmul.f32 %v1713_v28, %v586_v40  ;;  %v2249_v44 = vmax.f32 %v618_v41, 0.0  ;;  %v732_v40 = vld [vmem:[%s2482_s29 + $0x58] sm:$0xff]  ;;  %744 = vmatpush.msra.mxu3 %v733_v37 }
 0x3ed   :  { %v581_v45 = vsel %vm580_vm12, %v1711_v27, %v577_v42 }
 0x3ee   :  { %v602_v46 = vmul.f32 %v581_v45, %v554_v62  ;;  %v591_v47 = vsel %vm590_vm14, %v1713_v28, %v587_v43  ;;  %v623_v48 = vpack.c.bf16 %v2249_v44, %v2249_v44  ;;  %v731_v43 = vld [vmem:[%s2482_s29 + $0x50] sm:$0xff]  ;;  %745 = vmatpush.msra.mxu3 %v732_v40  ;;  %v1690_v40 = vld [vmem:[%s2484_s8] ss:$0 sm:$0xff] }
 0x3ef   :  { %v603_v50 = vmul.f32 %v591_v47, %v2230_v60  ;;  %v646_v60 = vpop.f32.mrf.mxu2 }
 0x3f0   :  { %v665_v52 = vsel %vm348_vm1, %v623_v48, 0  ;;  %v609_v53 = vmul.f32 %v1686_v31, %v602_v46  ;;  %v647_v7 = vadd.f32 %v1688_v13, %v646_v60  ;;  %v730_v46 = vld [vmem:[%s2482_s29 + $0x48] sm:$0xff]  ;;  %746 = vmatpush.msra.mxu3 %v731_v43  ;;  %v729_v48 = vld [vmem:[%s2482_s29 + $0x40] sm:$0xff] }
 0x3f1   :  { %673 = vmatpush.bf16.msrb.mxu0 %v665_v52  ;;  %v610_v54 = vmul.f32 %v1686_v31, %v603_v50  ;;  %v728_v50 = vld [vmem:[%s2482_s29 + $0x38] sm:$0xff]  ;;  %v727_v52 = vld [vmem:[%s2482_s29 + $0x30] sm:$0xff]  ;;  %v721_v60 = vld [vmem:[%s2482_s29] sm:$0xff] }
 0x3f2   :  { %v616_v55 = vadd.f32 %v1687_v2, %v609_v53  ;;  %747 = vmatpush.msra.mxu3 %v730_v46  ;;  %v726_v53 = vld [vmem:[%s2482_s29 + $0x28] sm:$0xff] }
 0x3f3   :  { %v617_v57 = vadd.f32 %v1687_v2, %v610_v54  ;;  %v725_v54 = vld [vmem:[%s2482_s29 + $0x20] sm:$0xff] }
 0x3f4   :  { %v2257_v58 = vmax.f32 %v616_v55, 0.0  ;;  %748 = vmatpush.msra.mxu3 %v729_v48  ;;  %v724_v55 = vld [vmem:[%s2482_s29 + $0x18] sm:$0xff] }
 0x3f5   :  { %v2259_v59 = vmax.f32 %v617_v57, 0.0  ;;  %v723_v57 = vld [vmem:[%s2482_s29 + $0x10] sm:$0xff] }
 0x3f6   :  { %749 = vmatpush.msra.mxu3 %v728_v50 }
 0x3f7   :  { %v622_v61 = vpack.c.bf16 %v2259_v59, %v2257_v58  ;;  %v649_v62 = vpop.f32.mrf.mxu2 }
 0x3f8   :  { %v650_v26 = vadd.f32 %v1688_v13, %v649_v62  ;;  %750 = vmatpush.msra.mxu3 %v727_v52  ;;  %v785_v62 = vld [vmem:[#allocation4 + $0x78] sm:$0xff] }
 0x3f9   :  { %674 = vmatpush.bf16.msrb.mxu0 %v622_v61  ;;  %v722_v61 = vld [vmem:[%s2482_s29 + $0x8] sm:$0xff] }
 0x3fa   :  { %751 = vmatpush.msra.mxu3 %v726_v53 }
 0x3fc   :  { %1602 = vmatmul.msk.bf16.vlgmr.msrb.gmra.mxu0 %vm338_vm2, %v2150_v11  ;;  %752 = vmatpush.msra.mxu3 %v725_v54 }
 0x3fe   :  { %753 = vmatpush.msra.mxu3 %v724_v55 }
 0x3ff   :  { %v652_v0 = vpop.f32.mrf.mxu2 }
 0x400   :  { %v653_v24 = vadd.f32 %v1688_v13, %v652_v0  ;;  %754 = vmatpush.msra.mxu3 %v723_v57  ;;  %v783_v0 = vld [vmem:[#allocation4 + $0x68] sm:$0xff] }
 0x402   :  { %755 = vmatpush.msra.mxu3 %v722_v61 }
 0x404   :  { %756 = vmatpush.msra.mxu3 %v721_v60 }
 0x407   :  { %v655_v3 = vpop.f32.mrf.mxu2 }
 0x408   :  { %v656_v22 = vadd.f32 %v1688_v13, %v655_v3  ;;  %v781_v3 = vld [vmem:[#allocation4 + $0x58] sm:$0xff] }
 0x40c   :  { %1603 = vmatmul.msk.bf16.gmra.mxu0 %vm338_vm2, %v2166_v15 }
 0x40f   :  { %v658_v9 = vpop.f32.mrf.mxu2 }
 0x410   :  { %v659_v21 = vadd.f32 %v1688_v13, %v658_v9 }
 0x417   :  { %v661_v17 = vpop.f32.mrf.mxu2 }
 0x418   :  { %v662_v23 = vadd.f32 %v1688_v13, %v661_v17  ;;  %v778_v13 = vld [vmem:[#allocation4 + $0x40] sm:$0xff]  ;;  %v777_v17 = vld [vmem:[#allocation4 + $0x38] sm:$0xff] }
 0x41c   :  { %1604 = vmatmul.msk.bf16.gmra.mxu0 %vm338_vm2, %v2182_v19 }
 0x479   :  { %v676_v63 = vpop.f32.mrf.mxu0 }
 0x47a   :  { %v677_v38 = vadd.f32 %v676_v63, %v647_v7  ;;  %v784_v63 = vld [vmem:[#allocation4 + $0x70] sm:$0xff]  ;;  %v770_v7 = vld [vmem:[#allocation4] sm:$0xff] }
 0x47c   :  { %v691_v45 = vmax.f32 %v677_v38, 0.0 }
 0x481   :  { %v678_v1 = vpop.f32.mrf.mxu0 }
 0x482   :  { %v679_v35 = vadd.f32 %v678_v1, %v650_v26  ;;  %v782_v1 = vld [vmem:[#allocation4 + $0x60] sm:$0xff] }
 0x484   :  { %v692_v41 = vmax.f32 %v679_v35, 0.0 }
 0x486   :  { %v697_v47 = vpack.c.bf16 %v692_v41, %v691_v45 }
 0x489   :  { %v681_v4 = vpop.f32.mrf.mxu0 }
 0x48a   :  { %v682_v31 = vadd.f32 %v681_v4, %v653_v24  ;;  %v775_v24 = vld [vmem:[#allocation4 + $0x28] sm:$0xff] }
 0x48c   :  { %v693_v39 = vmax.f32 %v682_v31, 0.0  ;;  %v1689_v31 = vld [vmem:[%s2483_s3] ss:$0 sm:$0xff] }
 0x491   :  { %v683_v5 = vpop.f32.mrf.mxu0 }
 0x492   :  { %v684_v27 = vadd.f32 %v683_v5, %v656_v22  ;;  %v780_v5 = vld [vmem:[#allocation4 + $0x50] sm:$0xff] }
 0x493   :  { %v776_v22 = vld [vmem:[#allocation4 + $0x30] sm:$0xff] }
 0x494   :  { %v694_v2 = vmax.f32 %v684_v27, 0.0 }
 0x496   :  { %v698_v42 = vpack.c.bf16 %v694_v2, %v693_v39 }
 0x499   :  { %v686_v10 = vpop.f32.mrf.mxu0 }
 0x49a   :  { %v687_v6 = vadd.f32 %v686_v10, %v659_v21  ;;  %v779_v10 = vld [vmem:[#allocation4 + $0x48] sm:$0xff] }
 0x49c   :  { %v695_v32 = vmax.f32 %v687_v6, 0.0  ;;  %v774_v6 = vld [vmem:[#allocation4 + $0x20] sm:$0xff] }
 0x4a1   :  { %v688_v25 = vpop.f32.mrf.mxu0 }
 0x4a2   :  { %v689_v28 = vadd.f32 %v688_v25, %v662_v23  ;;  %v773_v25 = vld [vmem:[#allocation4 + $0x18] sm:$0xff] }
 0x4a4   :  { %v696_v33 = vmax.f32 %v689_v28, 0.0 }
 0x4a6   :  { %v699_v36 = vpack.c.bf16 %v696_v33, %v695_v32 }
 0x4a8   :  { %705 = vmatpush.bf16.msra.mxu1 %v699_v36 }
 0x4ac   :  { %706 = vmatpush.bf16.msra.mxu1 %v698_v42 }
 0x4b0   :  { %707 = vmatpush.bf16.msra.mxu1 %v697_v47 }
 0x4b3   :  { %1605 = vmatmul.msk.bf16.vlgmr.msra.gmra.mxu1 %vm419_vm3, %v2192_v49 }
 0x4b4   :  { %790 = vmatpush.msrb.mxu1 %v785_v62 }
 0x4b6   :  { %791 = vmatpush.msrb.mxu1 %v784_v63 }
 0x4b8   :  { %792 = vmatpush.msrb.mxu1 %v783_v0 }
 0x4ba   :  { %793 = vmatpush.msrb.mxu1 %v782_v1 }
 0x4bc   :  { %794 = vmatpush.msrb.mxu1 %v781_v3 }
 0x4be   :  { %795 = vmatpush.msrb.mxu1 %v780_v5 }
 0x4c0   :  { %796 = vmatpush.msrb.mxu1 %v779_v10 }
 0x4c2   :  { %797 = vmatpush.msrb.mxu1 %v778_v13 }
 0x4c3   :  { %1606 = vmatmul.msk.bf16.gmra.mxu1 %vm419_vm3, %v2194_v56 }
 0x4c4   :  { %798 = vmatpush.msrb.mxu1 %v777_v17  ;;  %v898_v17 = vld [vmem:[%s2485_s14] sm:$0xff] }
 0x4c5   :  { %918 = vmatpush.msra.mxu2 %v898_v17 }
 0x4c6   :  { %799 = vmatpush.msrb.mxu1 %v776_v22  ;;  %1607 = vmatmul.msk.f32.vlgmr.msra.gmra.mxu2 %vm269_vm0, %v2142_v8 }
 0x4c8   :  { %800 = vmatpush.msrb.mxu1 %v775_v24 }
 0x4ca   :  { %801 = vmatpush.msrb.mxu1 %v774_v6 }
 0x4cc   :  { %802 = vmatpush.msrb.mxu1 %v773_v25 }
 0x4ce   :  { %803 = vmatpush.msrb.mxu1 %v772_v29  ;;  %1608 = vmatmul.msk.f32.gmra.mxu2 %vm269_vm0, %v2153_v12 }
 0x4d0   :  { %804 = vmatpush.msrb.mxu1 %v771_v30 }
 0x4d2   :  { %805 = vmatpush.msrb.mxu1 %v770_v7 }
 0x4d6   :  { %1609 = vmatmul.msk.f32.gmra.mxu2 %vm269_vm0, %v2161_v14 }
 0x4de   :  { %1610 = vmatmul.msk.f32.gmra.mxu2 %vm269_vm0, %v2169_v16 }
 0x4e6   :  { %1611 = vmatmul.msk.f32.gmra.mxu2 %vm269_vm0, %v2177_v18 }
 0x4ee   :  { %1612 = vmatmul.msk.f32.gmra.mxu2 %vm269_vm0, %v2185_v20  ;;  %v1693_v20 = vld [vmem:[%s2488_s7] ss:$0 sm:$0xff] }
 0x530   :  { %v709_v4 = vpop.f32.mrf.mxu1 }
 0x531   :  { %v718_v9 = vadd.f32 %v709_v4, %v2257_v58 }
 0x533   :  { %757 = vmatmul.f32.vlgmr.msra.gmra.mxu3 %v718_v9 }
 0x538   :  { %v711_v21 = vpop.f32.mrf.mxu1 }
 0x539   :  { %v719_v23 = vadd.f32 %v711_v21, %v2259_v59 }
 0x53b   :  { %760 = vmatmul.f32.gmra.mxu3 %v719_v23 }
 0x540   :  { %v714_v26 = vpop.f32.mrf.mxu1 }
 0x541   :  { %v720_v27 = vadd.f32 %v714_v26, %v2249_v44 }
 0x543   :  { %763 = vmatmul.f32.gmra.mxu3 %v720_v27 }
 0x548   :  { %v716_v28 = vpop.f32.mrf.mxu1 }
 0x549   :  { %v920_v18 = vpop.f32.mrf.mxu2 }
 0x5b6   :  { %v758_v32 = vpop.f32.mrf.mxu3 }
 0x5b7   :  { %v759_v33 = vadd.f32 %v1689_v31, %v758_v32 }
 0x5b9   :  { %v767_v34 = vmax.f32 %v759_v33, 0.0 }
 0x5bb   :  { %806 = vmatmul.f32.vlgmr.msrb.gmra.mxu1 %v767_v34 }
 0x5be   :  { %v761_v35 = vpop.f32.mrf.mxu3 }
 0x5bf   :  { %v762_v2 = vadd.f32 %v1689_v31, %v761_v35 }
 0x5c1   :  { %v768_v36 = vmax.f32 %v762_v2, 0.0  ;;  %v1691_v2 = vld [vmem:[%s2486_s30] ss:$0 sm:$0xff] }
 0x5c3   :  { %809 = vmatmul.f32.gmra.mxu1 %v768_v36 }
 0x5c6   :  { %v764_v37 = vpop.f32.mrf.mxu3 }
 0x5c7   :  { %v765_v38 = vadd.f32 %v1689_v31, %v764_v37 }
 0x5c9   :  { %v769_v39 = vmax.f32 %v765_v38, 0.0 }
 0x5cb   :  { %812 = vmatmul.f32.gmra.mxu1 %v769_v39 }
 0x638   :  { %v807_v41 = vpop.f32.mrf.mxu1 }
 0x639   :  { %v808_v42 = vadd.f32 %v1690_v40, %v807_v41 }
 0x63b   :  { %816 = vadd.xlane.f32.xlu2 %v808_v42 }
 0x640   :  { %v810_v43 = vpop.f32.mrf.mxu1 }
 0x641   :  { %v811_v47 = vadd.f32 %v1690_v40, %v810_v43 }
 0x648   :  { %v813_v45 = vpop.f32.mrf.mxu1 }
 0x649   :  { %v814_v46 = vadd.f32 %v1690_v40, %v813_v45  ;;  %v1692_v40 = vld [vmem:[%s2487_s27] ss:$0 sm:$0xff] }
 0x64b   :  { %820 = vadd.xlane.f32.xlu1 %v814_v46 }
 0x653   :  { %818 = vadd.xlane.f32.xlu1 %v811_v47 }
 0x6ae   :  { %v817_v48 = vpop.xlane.xlu2 %816 }
 0x6af   :  { %v822_v50 = vmul.f32 %v817_v48, %v2226_v51 }
 0x6b1   :  { %v825_v52 = vsub.f32 %v808_v42, %v822_v50 }
 0x6b3   :  { %v828_v53 = vmul.f32 %v825_v52, %v825_v52 }
 0x6b5   :  { %831 = vadd.xlane.f32.xlu0 %v828_v53 }
 0x6be   :  { %v821_v54 = vpop.xlane.xlu1 %820 }
 0x6bf   :  { %v824_v55 = vmul.f32 %v821_v54, %v2226_v51 }
 0x6c1   :  { %v827_v57 = vsub.f32 %v814_v46, %v824_v55 }
 0x6c3   :  { %v830_v61 = vmul.f32 %v827_v57, %v827_v57 }
 0x6c5   :  { %835 = vadd.xlane.f32.xlu2 %v830_v61 }
 0x6c6   :  { %v819_v60 = vpop.xlane.xlu1 %818 }
 0x6c7   :  { %v823_v62 = vmul.f32 %v819_v60, %v2226_v51 }
 0x6c9   :  { %v826_v63 = vsub.f32 %v811_v47, %v823_v62 }
 0x6cb   :  { %v829_v0 = vmul.f32 %v826_v63, %v826_v63 }
 0x6cd   :  { %833 = vadd.xlane.f32.xlu1 %v829_v0 }
 0x728   :  { %v832_v1 = vpop.xlane.xlu0 %831 }
 0x729   :  { %v837_v3 = vmul.f32 %v832_v1, %v2226_v51 }
 0x72b   :  { %v840_v4 = vadd.f32 1e-05, %v837_v3 }
 0x72d   :  { %1714 = vrsqrt.f32 %v840_v4  ;;  %vm849_vm4 = vweird.f32 %v840_v4 }
 0x733   :  { %v1715_v5 = vpop.eup %1714 }
 0x734   :  { %v844_v9 = vmul.f32 %v1715_v5, %v840_v4  ;;  %vm850_vm15 = vweird.f32 %v1715_v5 }
 0x735   :  { %vm851_vm6 = vmor %vm849_vm4, %vm850_vm15 }
 0x736   :  { %v845_v22 = vmul.f32 %v1715_v5, %v844_v9 }
 0x738   :  { %v836_v10 = vpop.xlane.xlu2 %835  ;;  %v846_v23 = vmul.f32 0.5, %v845_v22 }
 0x739   :  { %v839_v13 = vmul.f32 %v836_v10, %v2226_v51 }
 0x73a   :  { %v847_v27 = vsub.f32 1.5, %v846_v23 }
 0x73b   :  { %v842_v21 = vadd.f32 1e-05, %v839_v13 }
 0x73c   :  { %v848_v30 = vmul.f32 %v1715_v5, %v847_v27 }
 0x73d   :  { %1716 = vrsqrt.f32 %v842_v21  ;;  %vm869_vm7 = vweird.f32 %v842_v21 }
 0x73e   :  { %v852_v32 = vsel %vm851_vm6, %v1715_v5, %v848_v30 }
 0x73f   :  { %v873_v36 = vmul.f32 %v852_v32, %v825_v52 }
 0x740   :  { %v834_v24 = vpop.xlane.xlu1 %833 }
 0x741   :  { %v838_v6 = vmul.f32 %v834_v24, %v2226_v51  ;;  %v880_v42 = vmul.f32 %v1691_v2, %v873_v36  ;;  %v1010_v24 = vld [vmem:[#allocation6 + $0x78] sm:$0xff] }
 0x742   :  { %1015 = vmatpush.msra.mxu1 %v1010_v24 }
 0x743   :  { %v1717_v25 = vpop.eup %1716  ;;  %v841_v26 = vadd.f32 1e-05, %v838_v6  ;;  %v887_v50 = vadd.f32 %v1692_v40, %v880_v42  ;;  %v1009_v6 = vld [vmem:[#allocation6 + $0x70] sm:$0xff]  ;;  %v1000_v42 = vld [vmem:[#allocation6 + $0x28] sm:$0xff] }
 0x744   :  { %v864_v28 = vmul.f32 %v1717_v25, %v842_v21  ;;  %vm870_vm5 = vweird.f32 %v1717_v25  ;;  %1016 = vmatpush.msra.mxu1 %v1009_v6 }
 0x745   :  { %1718 = vrsqrt.f32 %v841_v26  ;;  %vm871_vm8 = vmor %vm869_vm7, %vm870_vm5  ;;  %vm859_vm10 = vweird.f32 %v841_v26 }
 0x746   :  { %v865_v29 = vmul.f32 %v1717_v25, %v864_v28 }
 0x748   :  { %v866_v7 = vmul.f32 0.5, %v865_v29  ;;  %v1008_v29 = vld [vmem:[#allocation6 + $0x68] sm:$0xff] }
 0x749   :  { %1017 = vmatpush.msra.mxu1 %v1008_v29 }
 0x74a   :  { %v867_v8 = vsub.f32 1.5, %v866_v7 }
 0x74b   :  { %v1719_v31 = vpop.eup %1718 }
 0x74c   :  { %v868_v33 = vmul.f32 %v1717_v25, %v867_v8  ;;  %v854_v12 = vmul.f32 %v1719_v31, %v841_v26  ;;  %vm860_vm9 = vweird.f32 %v1719_v31 }
 0x74d   :  { %vm861_vm11 = vmor %vm859_vm10, %vm860_vm9  ;;  %vm1237_vm9 = vcmask 23552   ;;  %vm1508_vm10 = vcmask 2048  }
 0x74e   :  { %v872_v34 = vsel %vm871_vm8, %v1717_v25, %v868_v33  ;;  %v855_v35 = vmul.f32 %v1719_v31, %v854_v12  ;;  %v921_v25 = vadd.f32 %v1693_v20, %v920_v18  ;;  %v1006_v12 = vld [vmem:[#allocation6 + $0x58] sm:$0xff] }
 0x74f   :  { %v875_v37 = vmul.f32 %v872_v34, %v827_v57  ;;  %v890_v57 = vmax.f32 %v887_v50, 0.0  ;;  %v1059_v50 = vld [vmem:[#allocation8 + $0x78] sm:$0xff] }
 0x750   :  { %v856_v38 = vmul.f32 0.5, %v855_v35  ;;  %v1051_v18 = vld [vmem:[#allocation8 + $0x38] sm:$0xff] }
 0x751   :  { %v882_v39 = vmul.f32 %v1691_v2, %v875_v37  ;;  %v2323_v61 = vadd.f32 %v890_v57, %v2257_v58  ;;  %v923_v58 = vpop.f32.mrf.mxu2  ;;  %v1004_v37 = vld [vmem:[#allocation6 + $0x48] sm:$0xff]  ;;  %v1054_v57 = vld [vmem:[#allocation8 + $0x50] sm:$0xff] }
 0x752   :  { %v857_v41 = vsub.f32 1.5, %v856_v38  ;;  %v924_v22 = vadd.f32 %v1693_v20, %v923_v58 }
 0x753   :  { %v889_v43 = vadd.f32 %v1692_v40, %v882_v39  ;;  %v1003_v39 = vld [vmem:[#allocation6 + $0x40] sm:$0xff] }
 0x754   :  { %v858_v14 = vmul.f32 %v1719_v31, %v857_v41  ;;  %v1001_v41 = vld [vmem:[#allocation6 + $0x30] sm:$0xff] }
 0x755   :  { %v892_v45 = vmax.f32 %v889_v43, 0.0  ;;  %v999_v43 = vld [vmem:[#allocation6 + $0x20] sm:$0xff] }
 0x756   :  { %v862_v46 = vsel %vm861_vm11, %v1719_v31, %v858_v14  ;;  %v1007_v31 = vld [vmem:[#allocation6 + $0x60] sm:$0xff]  ;;  %v998_v14 = vld [vmem:[#allocation6 + $0x18] sm:$0xff] }
 0x757   :  { %v874_v47 = vmul.f32 %v862_v46, %v826_v63  ;;  %v2315_v48 = vadd.f32 %v892_v45, %v2249_v44  ;;  %1018 = vmatpush.msra.mxu1 %v1007_v31  ;;  %v997_v45 = vld [vmem:[#allocation6 + $0x10] sm:$0xff]  ;;  %v996_v46 = vld [vmem:[#allocation6 + $0x8] sm:$0xff] }
 0x759   :  { %v881_v52 = vmul.f32 %v1691_v2, %v874_v47  ;;  %v897_v53 = vpack.c.bf16 %v2315_v48, %v2315_v48  ;;  %v926_v62 = vpop.f32.mrf.mxu2  ;;  %v1005_v2 = vld [vmem:[#allocation6 + $0x50] sm:$0xff]  ;;  %1019 = vmatpush.msra.mxu1 %v1006_v12  ;;  %v995_v47 = vld [vmem:[#allocation6] sm:$0xff] }
 0x75a   :  { %v927_v17 = vadd.f32 %v1693_v20, %v926_v62 }
 0x75b   :  { %v939_v54 = vsel %vm348_vm1, %v897_v53, 0  ;;  %v888_v55 = vadd.f32 %v1692_v40, %v881_v52  ;;  %1020 = vmatpush.msra.mxu1 %v1005_v2  ;;  %v1002_v40 = vld [vmem:[#allocation6 + $0x38] sm:$0xff]  ;;  %v1057_v52 = vld [vmem:[#allocation8 + $0x68] sm:$0xff]  ;;  %v1056_v53 = vld [vmem:[#allocation8 + $0x60] sm:$0xff] }
 0x75c   :  { %947 = vmatpush.bf16.msrb.mxu3 %v939_v54  ;;  %v1055_v54 = vld [vmem:[#allocation8 + $0x58] sm:$0xff] }
 0x75d   :  { %v891_v16 = vmax.f32 %v888_v55, 0.0  ;;  %1021 = vmatpush.msra.mxu1 %v1004_v37 }
 0x75f   :  { %v2326_v44 = vadd.f32 %v891_v16, %v2259_v59  ;;  %1022 = vmatpush.msra.mxu1 %v1003_v39 }
 0x761   :  { %v896_v60 = vpack.c.bf16 %v2326_v44, %v2323_v61  ;;  %v929_v0 = vpop.f32.mrf.mxu2  ;;  %1023 = vmatpush.msra.mxu1 %v1002_v40  ;;  %v1185_v40 = vld [vmem:[%s2491_s1 + $0x78] sm:$0xff] }
 0x762   :  { %1190 = vmatpush.msrb.mxu2 %v1185_v40 }
 0x763   :  { %948 = vmatpush.bf16.msrb.mxu3 %v896_v60  ;;  %1024 = vmatpush.msra.mxu1 %v1001_v41  ;;  %v1053_v60 = vld [vmem:[#allocation8 + $0x48] sm:$0xff] }
 0x764   :  { %v1184_v41 = vld [vmem:[%s2491_s1 + $0x70] sm:$0xff] }
 0x765   :  { %1025 = vmatpush.msra.mxu1 %v1000_v42  ;;  %1191 = vmatpush.msrb.mxu2 %v1184_v41  ;;  %v1183_v42 = vld [vmem:[%s2491_s1 + $0x68] sm:$0xff] }
 0x766   :  { %1613 = vmatmul.msk.bf16.vlgmr.msrb.gmra.mxu3 %vm338_vm2, %v2150_v11  ;;  %v930_v11 = vadd.f32 %v1693_v20, %v929_v0  ;;  %v1048_v0 = vld [vmem:[#allocation8 + $0x20] sm:$0xff] }
 0x767   :  { %1026 = vmatpush.msra.mxu1 %v999_v43  ;;  %1192 = vmatpush.msrb.mxu2 %v1183_v42  ;;  %v1182_v43 = vld [vmem:[%s2491_s1 + $0x60] sm:$0xff]  ;;  %v1884_v42 = vmov 0  }
 0x768   :  { %1680 = vset.pattern.permute.xlu2 %v1884_v42  ;;  %1681 = vset.pattern.permute.xlu1 %v1884_v42 }
 0x769   :  { %v932_v4 = vpop.f32.mrf.mxu2  ;;  %1027 = vmatpush.msra.mxu1 %v998_v14  ;;  %1193 = vmatpush.msrb.mxu2 %v1182_v43  ;;  %v1181_v14 = vld [vmem:[%s2491_s1 + $0x58] sm:$0xff] }
 0x76a   :  { %v933_v10 = vadd.f32 %v1693_v20, %v932_v4  ;;  %1682 = vset.pattern.permute.xlu0 %v1884_v42  ;;  %v1376_v42 = vld [vmem:[#allocation9 + $0x30] sm:$0xff] }
 0x76b   :  { %1028 = vmatpush.msra.mxu1 %v997_v45  ;;  %1194 = vmatpush.msrb.mxu2 %v1181_v14  ;;  %v1180_v45 = vld [vmem:[%s2491_s1 + $0x50] sm:$0xff] }
 0x76d   :  { %1029 = vmatpush.msra.mxu1 %v996_v46  ;;  %1195 = vmatpush.msrb.mxu2 %v1180_v45  ;;  %v1179_v46 = vld [vmem:[%s2491_s1 + $0x48] sm:$0xff] }
 0x76f   :  { %1030 = vmatpush.msra.mxu1 %v995_v47  ;;  %1196 = vmatpush.msrb.mxu2 %v1179_v46  ;;  %v1178_v47 = vld [vmem:[%s2491_s1 + $0x40] sm:$0xff] }
 0x771   :  { %v935_v9 = vpop.f32.mrf.mxu2  ;;  %1197 = vmatpush.msrb.mxu2 %v1178_v47 }
 0x772   :  { %v936_v13 = vadd.f32 %v1693_v20, %v935_v9  ;;  %v1046_v20 = vld [vmem:[#allocation8 + $0x10] sm:$0xff]  ;;  %v1045_v9 = vld [vmem:[#allocation8 + $0x8] sm:$0xff] }
 0x776   :  { %1614 = vmatmul.msk.bf16.gmra.mxu3 %vm338_vm2, %v2166_v15 }
 0x786   :  { %1615 = vmatmul.msk.bf16.gmra.mxu3 %vm338_vm2, %v2182_v19 }
 0x7e9   :  { %v950_v59 = vpop.f32.mrf.mxu3 }
 0x7ea   :  { %v951_v32 = vadd.f32 %v950_v59, %v921_v25  ;;  %v1050_v59 = vld [vmem:[#allocation8 + $0x30] sm:$0xff]  ;;  %v1695_v25 = vld [vmem:[%s2490_s20] ss:$0 sm:$0xff] }
 0x7ec   :  { %v965_v36 = vmax.f32 %v951_v32, 0.0 }
 0x7f1   :  { %v952_v63 = vpop.f32.mrf.mxu3 }
 0x7f2   :  { %v953_v30 = vadd.f32 %v952_v63, %v924_v22  ;;  %v1049_v63 = vld [vmem:[#allocation8 + $0x28] sm:$0xff] }
 0x7f4   :  { %v966_v34 = vmax.f32 %v953_v30, 0.0 }
 0x7f6   :  { %v971_v38 = vpack.c.bf16 %v966_v34, %v965_v36 }
 0x7f9   :  { %v955_v1 = vpop.f32.mrf.mxu3 }
 0x7fa   :  { %v956_v26 = vadd.f32 %v955_v1, %v927_v17  ;;  %v1047_v1 = vld [vmem:[#allocation8 + $0x18] sm:$0xff] }
 0x7fc   :  { %v967_v33 = vmax.f32 %v956_v26, 0.0 }
 0x801   :  { %v957_v3 = vpop.f32.mrf.mxu3 }
 0x802   :  { %v958_v19 = vadd.f32 %v957_v3, %v930_v11  ;;  %v1694_v11 = vld [vmem:[%s2489_s26] ss:$0 sm:$0xff] }
 0x804   :  { %v968_v7 = vmax.f32 %v958_v19, 0.0 }
 0x806   :  { %v972_v35 = vpack.c.bf16 %v968_v7, %v967_v33 }
 0x809   :  { %v960_v5 = vpop.f32.mrf.mxu3 }
 0x80a   :  { %v961_v15 = vadd.f32 %v960_v5, %v933_v10  ;;  %v1044_v10 = vld [vmem:[#allocation8] sm:$0xff] }
 0x80c   :  { %v969_v27 = vmax.f32 %v961_v15, 0.0 }
 0x811   :  { %v962_v21 = vpop.f32.mrf.mxu3 }
 0x812   :  { %v963_v23 = vadd.f32 %v962_v21, %v936_v13 }
 0x814   :  { %v970_v28 = vmax.f32 %v963_v23, 0.0 }
 0x816   :  { %v973_v8 = vpack.c.bf16 %v970_v28, %v969_v27 }
 0x818   :  { %979 = vmatpush.bf16.msra.mxu0 %v973_v8 }
 0x81c   :  { %980 = vmatpush.bf16.msra.mxu0 %v972_v35 }
 0x820   :  { %981 = vmatpush.bf16.msra.mxu0 %v971_v38 }
 0x823   :  { %1616 = vmatmul.msk.bf16.vlgmr.msra.gmra.mxu0 %vm419_vm3, %v2192_v49  ;;  %v1058_v49 = vld [vmem:[#allocation8 + $0x70] sm:$0xff] }
 0x824   :  { %1064 = vmatpush.msrb.mxu0 %v1059_v50  ;;  %v1177_v50 = vld [vmem:[%s2491_s1 + $0x38] sm:$0xff] }
 0x825   :  { %1198 = vmatpush.msrb.mxu2 %v1177_v50  ;;  %v256_v50 = vld [vmem:[%s2494_s6] sm:$0xff] }
 0x826   :  { %1065 = vmatpush.msrb.mxu0 %v1058_v49  ;;  %v1176_v49 = vld [vmem:[%s2491_s1 + $0x30] sm:$0xff]  ;;  %vm1216_vm6 = vcmp.gt.f32.partialorder %v256_v50, 0.0 }
 0x827   :  { %1199 = vmatpush.msrb.mxu2 %v1176_v49  ;;  %v258_v49 = vld [vmem:[%s2494_s6 + $0x10] sm:$0xff] }
 0x828   :  { %1066 = vmatpush.msrb.mxu0 %v1057_v52  ;;  %v1175_v52 = vld [vmem:[%s2491_s1 + $0x28] sm:$0xff]  ;;  %vm1218_vm7 = vcmp.gt.f32.partialorder %v258_v49, 0.0 }
 0x829   :  { %1200 = vmatpush.msrb.mxu2 %v1175_v52  ;;  %v257_v52 = vld [vmem:[%s2494_s6 + $0x8] sm:$0xff] }
 0x82a   :  { %1067 = vmatpush.msrb.mxu0 %v1056_v53  ;;  %v1174_v53 = vld [vmem:[%s2491_s1 + $0x20] sm:$0xff]  ;;  %vm1217_vm8 = vcmp.gt.f32.partialorder %v257_v52, 0.0 }
 0x82b   :  { %1201 = vmatpush.msrb.mxu2 %v1174_v53 }
 0x82c   :  { %1068 = vmatpush.msrb.mxu0 %v1055_v54  ;;  %v1173_v54 = vld [vmem:[%s2491_s1 + $0x18] sm:$0xff] }
 0x82d   :  { %1202 = vmatpush.msrb.mxu2 %v1173_v54 }
 0x82e   :  { %1069 = vmatpush.msrb.mxu0 %v1054_v57  ;;  %v1171_v57 = vld [vmem:[%s2491_s1 + $0x8] sm:$0xff] }
 0x830   :  { %1070 = vmatpush.msrb.mxu0 %v1053_v60 }
 0x833   :  { %1617 = vmatmul.msk.bf16.gmra.mxu0 %vm419_vm3, %v2194_v56  ;;  %v1052_v56 = vld [vmem:[#allocation8 + $0x40] sm:$0xff] }
 0x834   :  { %1071 = vmatpush.msrb.mxu0 %v1052_v56 }
 0x836   :  { %1072 = vmatpush.msrb.mxu0 %v1051_v18 }
 0x838   :  { %1073 = vmatpush.msrb.mxu0 %v1050_v59 }
 0x83a   :  { %1074 = vmatpush.msrb.mxu0 %v1049_v63 }
 0x83c   :  { %1075 = vmatpush.msrb.mxu0 %v1048_v0 }
 0x83e   :  { %1076 = vmatpush.msrb.mxu0 %v1047_v1 }
 0x840   :  { %1077 = vmatpush.msrb.mxu0 %v1046_v20 }
 0x842   :  { %1078 = vmatpush.msrb.mxu0 %v1045_v9 }
 0x844   :  { %1079 = vmatpush.msrb.mxu0 %v1044_v10 }
 0x8a0   :  { %v983_v55 = vpop.f32.mrf.mxu0 }
 0x8a1   :  { %v992_v16 = vadd.f32 %v983_v55, %v2323_v61  ;;  %v1172_v55 = vld [vmem:[%s2491_s1 + $0x10] sm:$0xff] }
 0x8a2   :  { %1203 = vmatpush.msrb.mxu2 %v1172_v55 }
 0x8a3   :  { %1031 = vmatmul.f32.vlgmr.msra.gmra.mxu1 %v992_v16  ;;  %v1170_v16 = vld [vmem:[%s2491_s1] sm:$0xff] }
 0x8a4   :  { %1204 = vmatpush.msrb.mxu2 %v1171_v57 }
 0x8a6   :  { %1205 = vmatpush.msrb.mxu2 %v1170_v16 }
 0x8a8   :  { %v985_v58 = vpop.f32.mrf.mxu0 }
 0x8a9   :  { %v993_v62 = vadd.f32 %v985_v58, %v2326_v44 }
 0x8ab   :  { %1034 = vmatmul.f32.gmra.mxu1 %v993_v62 }
 0x8b0   :  { %v988_v3 = vpop.f32.mrf.mxu0 }
 0x8b1   :  { %v994_v4 = vadd.f32 %v988_v3, %v2315_v48 }
 0x8b3   :  { %1037 = vmatmul.f32.gmra.mxu1 %v994_v4 }
 0x8b8   :  { %v990_v5 = vpop.f32.mrf.mxu0 }
 0x920   :  { %v1032_v13 = vpop.f32.mrf.mxu1 }
 0x921   :  { %v1033_v17 = vadd.f32 %v1694_v11, %v1032_v13 }
 0x923   :  { %v1041_v15 = vmax.f32 %v1033_v17, 0.0  ;;  %v1696_v17 = vld [vmem:[%s2492_s2] ss:$0 sm:$0xff] }
 0x925   :  { %1080 = vmatmul.f32.vlgmr.msrb.gmra.mxu0 %v1041_v15 }
 0x928   :  { %v1035_v21 = vpop.f32.mrf.mxu1 }
 0x929   :  { %v1036_v22 = vadd.f32 %v1694_v11, %v1035_v21 }
 0x92b   :  { %v1042_v19 = vmax.f32 %v1036_v22, 0.0 }
 0x92d   :  { %1083 = vmatmul.f32.gmra.mxu0 %v1042_v19  ;;  %v1697_v19 = vld [vmem:[%s2493_s24] ss:$0 sm:$0xff] }
 0x930   :  { %v1038_v23 = vpop.f32.mrf.mxu1 }
 0x931   :  { %v1039_v24 = vadd.f32 %v1694_v11, %v1038_v23 }
 0x933   :  { %v1043_v6 = vmax.f32 %v1039_v24, 0.0 }
 0x935   :  { %1086 = vmatmul.f32.gmra.mxu0 %v1043_v6 }
 0x9a2   :  { %v1081_v26 = vpop.f32.mrf.mxu0 }
 0x9a3   :  { %v1082_v27 = vadd.f32 %v1695_v25, %v1081_v26 }
 0x9a5   :  { %1090 = vadd.xlane.f32.xlu2 %v1082_v27 }
 0x9aa   :  { %v1084_v28 = vpop.f32.mrf.mxu0 }
 0x9ab   :  { %v1085_v29 = vadd.f32 %v1695_v25, %v1084_v28 }
 0x9ad   :  { %1092 = vadd.xlane.f32.xlu1 %v1085_v29 }
 0x9b2   :  { %v1087_v30 = vpop.f32.mrf.mxu0 }
 0x9b3   :  { %v1088_v7 = vadd.f32 %v1695_v25, %v1087_v30 }
 0x9b5   :  { %1094 = vadd.xlane.f32.xlu2 %v1088_v7 }
 0xa18   :  { %v1091_v8 = vpop.xlane.xlu2 %1090 }
 0xa19   :  { %v1096_v31 = vmul.f32 %v1091_v8, %v2226_v51 }
 0xa1b   :  { %v2349_v32 = vsub.f32 %v1082_v27, %v1096_v31 }
 0xa1d   :  { %v1102_v33 = vmul.f32 %v2349_v32, %v2349_v32 }
 0xa1f   :  { %1105 = vadd.xlane.f32.xlu1 %v1102_v33 }
 0xa20   :  { %v1093_v12 = vpop.xlane.xlu1 %1092 }
 0xa21   :  { %v1097_v34 = vmul.f32 %v1093_v12, %v2226_v51 }
 0xa23   :  { %v2354_v35 = vsub.f32 %v1085_v29, %v1097_v34 }
 0xa25   :  { %v1103_v2 = vmul.f32 %v2354_v35, %v2354_v35 }
 0xa27   :  { %1107 = vadd.xlane.f32.xlu2 %v1103_v2 }
 0xa28   :  { %v1095_v36 = vpop.xlane.xlu2 %1094 }
 0xa29   :  { %v1098_v37 = vmul.f32 %v1095_v36, %v2226_v51 }
 0xa2b   :  { %v2359_v38 = vsub.f32 %v1088_v7, %v1098_v37 }
 0xa2d   :  { %v1104_v39 = vmul.f32 %v2359_v38, %v2359_v38 }
 0xa2f   :  { %1109 = vadd.xlane.f32.xlu1 %v1104_v39 }
 0xa92   :  { %v1106_v60 = vpop.xlane.xlu1 %1105 }
 0xa93   :  { %v1111_v56 = vmul.f32 %v1106_v60, %v2226_v51 }
 0xa95   :  { %v1114_v18 = vadd.f32 1e-05, %v1111_v56 }
 0xa97   :  { %1720 = vrsqrt.f32 %v1114_v18  ;;  %vm1123_vm1 = vweird.f32 %v1114_v18 }
 0xa9a   :  { %v1108_v58 = vpop.xlane.xlu2 %1107 }
 0xa9b   :  { %v1112_v59 = vmul.f32 %v1108_v58, %v2226_v51 }
 0xa9d   :  { %v1721_v62 = vpop.eup %1720  ;;  %v1115_v63 = vadd.f32 1e-05, %v1112_v59 }
 0xa9e   :  { %v1118_v0 = vmul.f32 %v1721_v62, %v1114_v18  ;;  %vm1124_vm0 = vweird.f32 %v1721_v62 }
 0xa9f   :  { %1722 = vrsqrt.f32 %v1115_v63  ;;  %vm1125_vm3 = vmor %vm1123_vm1, %vm1124_vm0  ;;  %vm1133_vm13 = vweird.f32 %v1115_v63 }
 0xaa0   :  { %v1119_v1 = vmul.f32 %v1721_v62, %v1118_v0 }
 0xaa2   :  { %v1120_v3 = vmul.f32 0.5, %v1119_v1  ;;  %v1110_v4 = vpop.xlane.xlu1 %1109 }
 0xaa3   :  { %v1113_v5 = vmul.f32 %v1110_v4, %v2226_v51 }
 0xaa4   :  { %v1121_v20 = vsub.f32 1.5, %v1120_v3 }
 0xaa5   :  { %v1723_v9 = vpop.eup %1722  ;;  %v1116_v10 = vadd.f32 1e-05, %v1113_v5 }
 0xaa6   :  { %v1122_v11 = vmul.f32 %v1721_v62, %v1121_v20  ;;  %v1128_v13 = vmul.f32 %v1723_v9, %v1115_v63  ;;  %vm1134_vm12 = vweird.f32 %v1723_v9 }
 0xaa7   :  { %1724 = vrsqrt.f32 %v1116_v10  ;;  %vm1135_vm14 = vmor %vm1133_vm13, %vm1134_vm12  ;;  %vm1143_vm4 = vweird.f32 %v1116_v10 }
 0xaa8   :  { %v1126_v15 = vsel %vm1125_vm3, %v1721_v62, %v1122_v11  ;;  %v1129_v21 = vmul.f32 %v1723_v9, %v1128_v13 }
 0xaa9   :  { %v1147_v22 = vmul.f32 %v1126_v15, %v2349_v32 }
 0xaaa   :  { %v1130_v23 = vmul.f32 0.5, %v1129_v21 }
 0xaab   :  { %v1154_v24 = vmul.f32 %v1696_v17, %v1147_v22 }
 0xaac   :  { %v1131_v6 = vsub.f32 1.5, %v1130_v23 }
 0xaad   :  { %v1725_v51 = vpop.eup %1724  ;;  %v1161_v25 = vadd.f32 %v1697_v19, %v1154_v24 }
 0xaae   :  { %v1132_v26 = vmul.f32 %v1723_v9, %v1131_v6  ;;  %v1138_v27 = vmul.f32 %v1725_v51, %v1116_v10  ;;  %vm1144_vm15 = vweird.f32 %v1725_v51 }
 0xaaf   :  { %v1164_v28 = vmax.f32 %v1161_v25, 0.0  ;;  %vm1145_vm5 = vmor %vm1143_vm4, %vm1144_vm15 }
 0xab0   :  { %v1136_v29 = vsel %vm1135_vm14, %v1723_v9, %v1132_v26  ;;  %v1139_v30 = vmul.f32 %v1725_v51, %v1138_v27 }
 0xab1   :  { %v2386_v7 = vadd.f32 %v1164_v28, %v2323_v61  ;;  %v1148_v8 = vmul.f32 %v1136_v29, %v2354_v35 }
 0xab2   :  { %v1140_v31 = vmul.f32 0.5, %v1139_v30 }
 0xab3   :  { %1206 = vmatmul.f32.vlgmr.msrb.gmra.mxu2 %v2386_v7  ;;  %v1155_v32 = vmul.f32 %v1696_v17, %v1148_v8 }
 0xab4   :  { %v1141_v33 = vsub.f32 1.5, %v1140_v31 }
 0xab5   :  { %v1162_v12 = vadd.f32 %v1697_v19, %v1155_v32 }
 0xab6   :  { %v1142_v34 = vmul.f32 %v1725_v51, %v1141_v33 }
 0xab7   :  { %v1165_v2 = vmax.f32 %v1162_v12, 0.0  ;;  %v1385_v12 = vld [vmem:[#allocation9 + $0x78] sm:$0xff] }
 0xab8   :  { %v1146_v36 = vsel %vm1145_vm5, %v1725_v51, %v1142_v34  ;;  %v1384_v34 = vld [vmem:[#allocation9 + $0x70] sm:$0xff]  ;;  %1390 = vmatpush.msra.mxu0 %v1385_v12 }
 0xab9   :  { %v2391_v37 = vadd.f32 %v1165_v2, %v2326_v44  ;;  %v1149_v61 = vmul.f32 %v1146_v36, %v2359_v38  ;;  %v1698_v44 = vld [vmem:[#allocation2] ss:$0 sm:$0xff]  ;;  %v1383_v36 = vld [vmem:[#allocation9 + $0x68] sm:$0xff] }
 0xaba   :  { %1391 = vmatpush.msra.mxu0 %v1384_v34 }
 0xabb   :  { %1209 = vmatmul.f32.gmra.mxu2 %v2391_v37  ;;  %v1156_v35 = vmul.f32 %v1696_v17, %v1149_v61  ;;  %v1382_v61 = vld [vmem:[#allocation9 + $0x60] sm:$0xff] }
 0xabc   :  { %1392 = vmatpush.msra.mxu0 %v1383_v36 }
 0xabd   :  { %v1163_v39 = vadd.f32 %v1697_v19, %v1156_v35  ;;  %v1381_v35 = vld [vmem:[#allocation9 + $0x58] sm:$0xff] }
 0xabe   :  { %1393 = vmatpush.msra.mxu0 %v1382_v61 }
 0xabf   :  { %v1166_v40 = vmax.f32 %v1163_v39, 0.0 }
 0xac0   :  { %1394 = vmatpush.msra.mxu0 %v1381_v35 }
 0xac1   :  { %v2396_v41 = vadd.f32 %v1166_v40, %v2315_v48  ;;  %v1380_v40 = vld [vmem:[#allocation9 + $0x50] sm:$0xff] }
 0xac2   :  { %1395 = vmatpush.msra.mxu0 %v1380_v40 }
 0xac3   :  { %1212 = vmatmul.f32.gmra.mxu2 %v2396_v41 }
 0xb36   :  { %v1207_v43 = vpop.f32.mrf.mxu2 }
 0xb37   :  { %v1208_v38 = vadd.f32 %v1698_v44, %v1207_v43  ;;  %v1374_v43 = vld [vmem:[#allocation9 + $0x20] sm:$0xff] }
 0xb39   :  { %1221 = vperm.xlu2 %1680, %v1208_v38  }
 0xb3e   :  { %v1210_v14 = vpop.f32.mrf.mxu2 }
 0xb3f   :  { %v1211_v45 = vadd.f32 %v1698_v44, %v1210_v14  ;;  %v1372_v14 = vld [vmem:[#allocation9 + $0x10] sm:$0xff] }
 0xb41   :  { %1226 = vperm.xlu1 %1681, %v1211_v45  }
 0xb46   :  { %v1213_v46 = vpop.f32.mrf.mxu2 }
 0xb47   :  { %v1214_v47 = vadd.f32 %v1698_v44, %v1213_v46  ;;  %v1375_v44 = vld [vmem:[#allocation9 + $0x28] sm:$0xff]  ;;  %v1370_v46 = vld [vmem:[#allocation9] sm:$0xff] }
 0xb49   :  { %1231 = vperm.xlu2 %1680, %v1214_v47  }
 0xb93   :  { %v1222_v48 = vpop.permute.xlu2 %1221 }
 0xb94   :  { %v1234_v54 = vsel %vm1216_vm6, %v1222_v48, -1e+30  ;;  %v1435_v48 = vld [vmem:[%s2066_s19 + $0x70] sm:$0xff] }
 0xb95   :  { %v1238_v60 = vsel %vm1237_vm9, %v1234_v54, -inf  ;;  %v1430_v54 = vld [vmem:[%s2066_s19 + $0x48] sm:$0xff] }
 0xba3   :  { %v1232_v53 = vpop.permute.xlu2 %1231 }
 0xba4   :  { %v1236_v57 = vsel %vm1218_vm7, %v1232_v53, -1e+30  ;;  %v1431_v53 = vld [vmem:[%s2066_s19 + $0x50] sm:$0xff] }
 0xba5   :  { %v1240_v58 = vsel %vm1237_vm9, %v1236_v57, -inf  ;;  %v1428_v57 = vld [vmem:[%s2066_s19 + $0x38] sm:$0xff] }
 0xbb3   :  { %v1227_v55 = vpop.permute.xlu1 %1226 }
 0xbb4   :  { %v1235_v16 = vsel %vm1217_vm8, %v1227_v55, -1e+30  ;;  %v1429_v55 = vld [vmem:[%s2066_s19 + $0x40] sm:$0xff] }
 0xbb5   :  { %v1239_v56 = vsel %vm1237_vm9, %v1235_v16, -inf  ;;  %v1427_v16 = vld [vmem:[%s2066_s19 + $0x30] sm:$0xff] }
 0xbb6   :  { %v1241_v18 = vmax.f32 %v1238_v60, %v1239_v56  ;;  %v1426_v60 = vld [vmem:[%s2066_s19 + $0x28] sm:$0xff] }
 0xbb8   :  { %v1242_v59 = vmax.f32 %v1241_v18, %v1240_v58 }
 0xbba   :  { %v1243_v62 = vrot.slane %v1242_v59, 4 }
 0xbbc   :  { %v1244_v63 = vmax.f32 %v1242_v59, %v1243_v62  ;;  %v1425_v59 = vld [vmem:[%s2066_s19 + $0x20] sm:$0xff]  ;;  %v1424_v62 = vld [vmem:[%s2066_s19 + $0x18] sm:$0xff] }
 0xbbe   :  { %v1245_v0 = vrot.slane %v1244_v63, 2 }
 0xbc0   :  { %v1246_v1 = vmax.f32 %v1244_v63, %v1245_v0  ;;  %v1423_v63 = vld [vmem:[%s2066_s19 + $0x10] sm:$0xff]  ;;  %v1422_v0 = vld [vmem:[%s2066_s19 + $0x8] sm:$0xff] }
 0xbc2   :  { %v1247_v3 = vrot.slane %v1246_v1, 1 }
 0xbc4   :  { %v1248_v4 = vmax.f32 %v1246_v1, %v1247_v3  ;;  %v1421_v1 = vld [vmem:[%s2066_s19] sm:$0xff]  ;;  %v1479_v3 = vld [vmem:[%s2086_s23 + $0x38] sm:$0xff] }
 0xbc6   :  { %v1251_v5 = vsel %vm1218_vm7, %v1248_v4, -1e+30  ;;  %v1250_v20 = vsel %vm1217_vm8, %v1248_v4, -1e+30  ;;  %v1249_v11 = vsel %vm1216_vm6, %v1248_v4, -1e+30 }
 0xbc7   :  { %v1258_v9 = vsel %vm1237_vm9, %v1251_v5, -inf  ;;  %v1255_v10 = vsel %vm1237_vm9, %v1250_v20, -inf  ;;  %v1252_v13 = vsel %vm1237_vm9, %v1249_v11, -inf  ;;  %v1478_v4 = vld [vmem:[%s2086_s23 + $0x30] sm:$0xff]  ;;  %v1477_v5 = vld [vmem:[%s2086_s23 + $0x28] sm:$0xff] }
 0xbc8   :  { %1259 = vmax.xlane.f32.xlu2 %v1258_v9  ;;  %1256 = vmax.xlane.f32.xlu1 %v1255_v10  ;;  %v1699_v20 = vld [vmem:[%s2495_s10] ss:$0 sm:$0xff] }
 0xbc9   :  { %v1700_v9 = vld [vmem:[%s2496_s15] ss:$0 sm:$0xff] }
 0xbd0   :  { %1253 = vmax.xlane.f32.xlu2 %v1252_v13  ;;  %v1701_v13 = vld [vmem:[%s2497_s4] ss:$0 sm:$0xff] }
 0xc02   :  { %1288 = vxpose.xlu1.b32.start [1/3] (short) (narrow) %v256_v50, 8  ;;  %v1434_v50 = vld [vmem:[%s2066_s19 + $0x68] sm:$0xff] }
 0xc0a   :  { %1289 = vxpose.xlu1.b32.cont [2/3] (short) (narrow) %v257_v52, 8  ;;  %v1432_v52 = vld [vmem:[%s2066_s19 + $0x58] sm:$0xff] }
 0xc12   :  { %1290 = vxpose.xlu1.b32.end [3/3] (short) (narrow) %v258_v49, 8  ;;  %v1433_v49 = vld [vmem:[%s2066_s19 + $0x60] sm:$0xff] }
 0xc3b   :  { %v1260_v17 = vpop.xlane.xlu2 %1259  ;;  %v1257_v15 = vpop.xlane.xlu1 %1256 }
 0xc3c   :  { %v1263_v21 = vsub.f32 %v1214_v47, %v1260_v17  ;;  %v1262_v22 = vsub.f32 %v1211_v45, %v1257_v15  ;;  %v1371_v45 = vld [vmem:[#allocation9 + $0x8] sm:$0xff]  ;;  %v1436_v47 = vld [vmem:[%s2066_s19 + $0x78] sm:$0xff] }
 0xc3d   :  { %1441 = vmatpush.msra.mxu2 %v1436_v47 }
 0xc3e   :  { %v1268_v19 = vmul.f32 1.442695, %v1263_v21  ;;  %v1266_v23 = vmul.f32 1.442695, %v1262_v22  ;;  %v1476_v22 = vld [vmem:[%s2086_s23 + $0x20] sm:$0xff] }
 0xc3f   :  { %1442 = vmatpush.msra.mxu2 %v1435_v48 }
 0xc40   :  { %1726 = vpow2.f32 %v1268_v19  ;;  %v1475_v19 = vld [vmem:[%s2086_s23 + $0x18] sm:$0xff] }
 0xc41   :  { %1728 = vpow2.f32 %v1266_v23  ;;  %1443 = vmatpush.msra.mxu2 %v1434_v50  ;;  %v1474_v23 = vld [vmem:[%s2086_s23 + $0x10] sm:$0xff] }
 0xc43   :  { %v1254_v24 = vpop.xlane.xlu2 %1253  ;;  %1444 = vmatpush.msra.mxu2 %v1433_v49 }
 0xc44   :  { %v1261_v6 = vsub.f32 %v1208_v38, %v1254_v24  ;;  %v1373_v38 = vld [vmem:[#allocation9 + $0x18] sm:$0xff]  ;;  %v1473_v24 = vld [vmem:[%s2086_s23 + $0x8] sm:$0xff] }
 0xc45   :  { %1445 = vmatpush.msra.mxu2 %v1432_v52 }
 0xc46   :  { %v1727_v51 = vpop.eup %1726  ;;  %v1264_v25 = vmul.f32 1.442695, %v1261_v6  ;;  %v1472_v6 = vld [vmem:[%s2086_s23] sm:$0xff] }
 0xc47   :  { %v1729_v26 = vpop.eup %1728  ;;  %1356 = vmatpush.msrb.mxu1 %v1727_v51  ;;  %1282 = vperm.xlu2 %1680, %v1727_v51   ;;  %v1702_v51 = vld [vmem:[%s2498_s18] ss:$0 sm:$0xff] }
 0xc48   :  { %1730 = vpow2.f32 %v1264_v25  ;;  %1277 = vperm.xlu0 %1682, %v1729_v26   ;;  %1446 = vmatpush.msra.mxu2 %v1431_v53  ;;  %v1703_v25 = vld [vmem:[%s2499_s11] ss:$0 sm:$0xff] }
 0xc49   :  { %1357 = vmatpush.msrb.mxu1 %v1729_v26 }
 0xc4a   :  { %1447 = vmatpush.msra.mxu2 %v1430_v54 }
 0xc4c   :  { %1448 = vmatpush.msra.mxu2 %v1429_v55 }
 0xc4e   :  { %v1731_v27 = vpop.eup %1730  ;;  %1449 = vmatpush.msra.mxu2 %v1428_v57 }
 0xc4f   :  { %1272 = vperm.xlu2 %1680, %v1731_v27   ;;  %1358 = vmatpush.msrb.mxu1 %v1731_v27 }
 0xc50   :  { %1450 = vmatpush.msra.mxu2 %v1427_v16 }
 0xc52   :  { %1451 = vmatpush.msra.mxu2 %v1426_v60 }
 0xc54   :  { %1452 = vmatpush.msra.mxu2 %v1425_v59 }
 0xc56   :  { %1453 = vmatpush.msra.mxu2 %v1424_v62 }
 0xc58   :  { %1454 = vmatpush.msra.mxu2 %v1423_v63 }
 0xc5a   :  { %1455 = vmatpush.msra.mxu2 %v1422_v0 }
 0xc5c   :  { %1456 = vmatpush.msra.mxu2 %v1421_v1 }
 0xca1   :  { %v1283_v28 = vpop.permute.xlu2 %1282 }
 0xca2   :  { %v1287_v29 = vmul.f32 %v1283_v28, %v2396_v41  ;;  %v1377_v41 = vld [vmem:[#allocation9 + $0x38] sm:$0xff] }
 0xca3   :  { %v1704_v28 = vld [vmem:[%s2081_s16] ss:$0 sm:$0xff] }
 0xca4   :  { %1336 = vmatpush.msra.mxu3 %v1287_v29 }
 0xca6   :  { %v1304_v30 = vpop.trf.xlu1 }
 0xca7   :  { %1619 = vmatmul.msk.f32.vlgmr.msrb.gmra.mxu1 %vm338_vm2, %v1304_v30 }
 0xca9   :  { %v1273_v8 = vpop.permute.xlu2 %1272 }
 0xcaa   :  { %v1285_v33 = vmul.f32 %v1273_v8, %v2386_v7  ;;  %v1379_v7 = vld [vmem:[#allocation9 + $0x48] sm:$0xff] }
 0xcab   :  { %1396 = vmatpush.msra.mxu0 %v1379_v7 }
 0xcba   :  { %v1278_v31 = vpop.permute.xlu0 %1277 }
 0xcbb   :  { %v1286_v32 = vmul.f32 %v1278_v31, %v2391_v37  ;;  %v1378_v37 = vld [vmem:[#allocation9 + $0x40] sm:$0xff]  ;;  %v1705_v31 = vld [vmem:[#allocation3] ss:$0 sm:$0xff] }
 0xcbc   :  { %1397 = vmatpush.msra.mxu0 %v1378_v37 }
 0xcbd   :  { %1337 = vmatpush.msra.mxu3 %v1286_v32 }
 0xcbe   :  { %1398 = vmatpush.msra.mxu0 %v1377_v41 }
 0xcbf   :  { %1338 = vmatpush.msra.mxu3 %v1285_v33 }
 0xcc0   :  { %1618 = vmatmul.msk.f32.vlgmr.msra.gmra.mxu3 %vm338_vm2, %v1304_v30  ;;  %1399 = vmatpush.msra.mxu0 %v1376_v42  ;;  %vm1484_vm2 = vcmask 523264  }
 0xcc1   :  { %1496 = vmatpush.msrb.mxu3 %v1479_v3 }
 0xcc2   :  { %1400 = vmatpush.msra.mxu0 %v1375_v44 }
 0xcc3   :  { %1497 = vmatpush.msrb.mxu3 %v1478_v4 }
 0xcc4   :  { %1401 = vmatpush.msra.mxu0 %v1374_v43 }
 0xcc5   :  { %1498 = vmatpush.msrb.mxu3 %v1477_v5 }
 0xcc6   :  { %1402 = vmatpush.msra.mxu0 %v1373_v38 }
 0xcc7   :  { %1499 = vmatpush.msrb.mxu3 %v1476_v22 }
 0xcc8   :  { %1403 = vmatpush.msra.mxu0 %v1372_v14 }
 0xcc9   :  { %1500 = vmatpush.msrb.mxu3 %v1475_v19 }
 0xcca   :  { %1404 = vmatpush.msra.mxu0 %v1371_v45 }
 0xccb   :  { %1501 = vmatpush.msrb.mxu3 %v1474_v23 }
 0xccc   :  { %1405 = vmatpush.msra.mxu0 %v1370_v46 }
 0xccd   :  { %1502 = vmatpush.msrb.mxu3 %v1473_v24 }
 0xccf   :  { %1503 = vmatpush.msrb.mxu3 %v1472_v6 }
 0xd24   :  { %v1360_v2 = vpop.f32.mrf.mxu1 }
 0xd25   :  { %1732 = vrcp.f32 %v1360_v2 }
 0xd2b   :  { %v1733_v39 = vpop.eup %1732 }
 0xd2c   :  { %1366 = vperm.xlu2 %1680, %v1733_v39  }
 0xd43   :  { %v1340_v56 = vpop.f32.mrf.mxu3 }
 0xd86   :  { %v1367_v18 = vpop.permute.xlu2 %1366 }
 0xd87   :  { %v1369_v58 = vmul.f32 %v1367_v18, %v1340_v56 }
 0xd89   :  { %1406 = vmatmul.f32.vlgmr.msra.gmra.mxu0 %v1369_v58 }
 0xe06   :  { %v1407_v10 = vpop.f32.mrf.mxu0 }
 0xe07   :  { %v1408_v11 = vadd.f32 %v1699_v20, %v1407_v10 }
 0xe09   :  { %v1414_v17 = vmul.f32 %v1700_v9, %v1408_v11 }
 0xe0b   :  { %v1419_v15 = vadd.f32 %v1701_v13, %v1414_v17 }
 0xe0d   :  { %v1420_v21 = vmax.f32 %v1419_v15, 0.0 }
 0xe0f   :  { %1457 = vmatmul.f32.vlgmr.msra.gmra.mxu2 %v1420_v21 }
 0xe92   :  { %v1458_v26 = vpop.f32.mrf.mxu2 }
 0xe93   :  { %v1459_v27 = vadd.f32 %v1702_v51, %v1458_v26 }
 0xe95   :  { %v1465_v29 = vmul.f32 %v1703_v25, %v1459_v27 }
 0xe97   :  { %v1470_v30 = vadd.f32 %v1704_v28, %v1465_v29 }
 0xe99   :  { %v1471_v8 = vmax.f32 %v1470_v30, 0.0 }
 0xe9b   :  { %1620 = vmatmul.msk.f32.vlgmr.msrb.gmra.mxu3 %vm1484_vm2, %v1471_v8 }
 0xf1e   :  { %v1505_v32 = vpop.f32.mrf.mxu3 }
 0xf1f   :  { %v1506_v33 = vadd.f32 %v1705_v31, %v1505_v32 }
 0xf21   :  { %1509 = vst.msk [vmem:[%s2091_s28] sm:$0x7] %vm1508_vm10, %v1506_v33 }
 0xf22   :  { %1514 = vsyncpa [#allocation5], 1 }
 0xf23   :  { %1515 = vsyncpa [#allocation7], 1 }
 0xf24   :  { %1516 = vsyncpa [#allocation10], 1 }

</bundles_post_ra>
